<compile_context>
chip_gen: v5e
topology: v5e:2x2
jax: 0.10.0
libtpu: 0.0.40
codegen_flags: <defaults>
</compile_context>

<pallas_src>
import functools

import jax
import jax.numpy as jnp
from jax import lax
from jax.experimental import pallas as pl
from jax.experimental.pallas import tpu as pltpu


def _round_up(x, m):
    return ((x + m - 1) // m) * m


def _vmem_capacity_bytes():
    try:
        return int(pltpu.get_tpu_info().vmem_capacity_bytes)
    except Exception:
        return 64 * 1024 * 1024  # conservative (v7x-sized) fallback


def _exp_dtype_for_device():
    """bf16 EUP exp path exists on v6e/v7x; v5e and older have no bf16 EUP."""
    try:
        kind = jax.devices()[0].device_kind.lower()
    except Exception:
        kind = ""
    for old in ("v2", "v3", "v4", "v5"):
        if old in kind:
            return jnp.float32
    return jnp.bfloat16


def _pick_tq(n_pad, c, c8, vmem_cap, attn_itemsize):
    """Largest query tile (multiple of 128 dividing n_pad) fitting the VMEM budget."""
    budget = int(vmem_cap * 0.65)  # aligned with the 0.8*cap vmem_limit, minus headroom
    # Per-query-row steady-state bytes:
    #   ~2 live f32 (TQ,Np) slabs (energy -> e -> attn are sequentially dead; keep a
    #   2-slab allowance for compiler temporaries) + bf16 MXU operand
    #   + double-buffered attention output + double-buffered small tiles.
    per_row = n_pad * (2 * 4 + 2 + 2 * attn_itemsize) + 2 * (8 * c + 2 * c8)
    resident = 2 * 2 * (c + c8) * n_pad  # double-buffered bf16 K and V
    tq_cap = max(128, (budget - resident) // max(per_row, 1))
    tq_cap = min(tq_cap, 512)  # measured tile curve: 512 -> 1024 is ~1%, 2x live set
    nblocks = n_pad // 128
    best = 128
    for d in range(1, nblocks + 1):
        if nblocks % d == 0 and d * 128 <= tq_cap:
            best = d * 128
    return best


def _self_attention_kernel(gamma_ref, *refs, padded, store_attn, exp_dtype):
    idx = 0
    if padded:
        mask_ref = refs[idx]
        idx += 1
    x_ref, q_ref, k_ref, v_ref = refs[idx:idx + 4]
    idx += 4
    out_ref = refs[idx]
    idx += 1
    attn_ref = refs[idx] if store_attn else None

    q = q_ref[0]          # (C8p, TQ) bf16 query tile
    k = k_ref[0]          # (C8p, Np) bf16 keys   (resident per batch element)
    v = v_ref[0]          # (C,   Np) bf16 values (resident per batch element)
    x = x_ref[0]          # (C,   TQ) f32 residual tile

    # energy[i, j] = sum_c q[c, i] * k[c, j]  == Q^T K, no explicit transpose.
    energy = lax.dot_general(q, k, (((0,), (0,)), ((), ())),
                             preferred_element_type=jnp.float32)      # (TQ, Np) f32

    if padded:
        # Precomputed additive bias row {0, -1e30}: one broadcast add instead of
        # iota + compare + select passes over the slab.
        energy = energy + mask_ref[...]

    # Numerically-stable softmax: max-subtract in f32, exp in exp_dtype (bf16 on
    # v6e/v7x), row-sum and reciprocal in f32.
    m = jnp.max(energy, axis=-1, keepdims=True)
    e = jnp.exp((energy - m).astype(exp_dtype))                       # (TQ, Np)
    denom = jnp.sum(e.astype(jnp.float32), axis=-1, keepdims=True)    # f32
    inv = pl.reciprocal(denom, approx=True)                           # EUP slot

    if jnp.dtype(exp_dtype) == jnp.float32:
        attn_full = e * inv                                           # f32
        attn_b = attn_full.astype(jnp.bfloat16)                       # MXU operand
    else:
        attn_b = e * inv.astype(e.dtype)                              # stays bf16
        attn_full = attn_b

    if store_attn:
        # Store before the second matmul; for bf16 attn_dtype this reuses attn_b
        # directly (no second full-slab convert pass).
        attn_ref[0] = attn_full.astype(attn_ref.dtype)

    # out[c, i] = sum_j v[c, j] * attn[i, j]  == V A^T, no explicit transpose;
    # (C, TQ) result stores lane-dense.
    out = lax.dot_general(v, attn_b, (((1,), (1,)), ((), ())),
                          preferred_element_type=jnp.float32)         # (C, TQ) f32

    out_ref[0] = (gamma_ref[0] * out + x).astype(out_ref.dtype)


def self_attention_pallas(x_nchw, wq, bq, wk, bk, wv, bv, gamma, *,
                          attn_dtype=jnp.bfloat16,
                          return_attention=True,
                          return_padded_attention=False):
    """SAGAN SelfAttention forward.

    x_nchw: (B, C, H, W) f32.  Returns (out (B, C, H, W) f32, attention).
    attention is (B, N, N) by default.  When N % 128 != 0 and
    return_padded_attention=True the padded (B, Np, Np) map is returned
    (valid block [:N, :N]) to avoid a full extra HBM copy from slicing.
    return_attention=False skips materializing the attention map entirely.
    """
    B, C, H, W = x_nchw.shape
    N = H * W
    C8 = wq.shape[0]

    # Zero-pad Q/K output channels to >= 16 for clean bf16 sublane packing
    # (zero rows contribute 0 to the energy contraction).
    C8p = C8 if C8 >= 16 else 16
    if C8p != C8:
        wq = jnp.pad(wq, ((0, C8p - C8), (0, 0)))
        bq = jnp.pad(bq, (0, C8p - C8))
        wk = jnp.pad(wk, ((0, C8p - C8), (0, 0)))
        bk = jnp.pad(bk, (0, C8p - C8))

    vmem_cap = _vmem_capacity_bytes()
    Np = _round_up(N, 128)
    padded = Np != N
    attn_itemsize = jnp.dtype(attn_dtype).itemsize if return_attention else 0
    TQ = _pick_tq(Np, C, C8p, vmem_cap, attn_itemsize)
    vmem_limit = min(int(vmem_cap * 0.8), 128 * 1024 * 1024)
    exp_dtype = _exp_dtype_for_device()

    x_flat = x_nchw.reshape(B, C, N).astype(jnp.float32)
    if padded:
        x_flat = jnp.pad(x_flat, ((0, 0), (0, 0), (0, Np - N)))

    # Hoisted 1x1-conv projections (once per element in XLA, not per query tile).
    q = (jnp.einsum('oc,bcn->bon', wq, x_flat) + bq[None, :, None]).astype(jnp.bfloat16)
    k = (jnp.einsum('oc,bcn->bon', wk, x_flat) + bk[None, :, None]).astype(jnp.bfloat16)
    v = (jnp.einsum('oc,bcn->bon', wv, x_flat) + bv[None, :, None]).astype(jnp.bfloat16)

    gamma1 = jnp.asarray(gamma, jnp.float32).reshape(1)

    in_specs = [pl.BlockSpec(memory_space=pltpu.MemorySpace.SMEM)]     # gamma
    args = [gamma1]
    if padded:
        mask_row = jnp.where(jnp.arange(Np) < N, 0.0, -1e30)
        mask_row = mask_row.astype(jnp.float32).reshape(1, Np)
        in_specs.append(pl.BlockSpec((1, Np), lambda b, i: (0, 0)))    # bias row
        args.append(mask_row)
    in_specs += [
        pl.BlockSpec((1, C, TQ), lambda b, i: (b, 0, i)),              # x tile
        pl.BlockSpec((1, C8p, TQ), lambda b, i: (b, 0, i)),            # q tile
        pl.BlockSpec((1, C8p, Np), lambda b, i: (b, 0, 0)),            # K (resident)
        pl.BlockSpec((1, C, Np), lambda b, i: (b, 0, 0)),              # V (resident)
    ]
    args += [x_flat, q, k, v]

    out_shapes = [jax.ShapeDtypeStruct((B, C, Np), jnp.float32)]
    out_specs = [pl.BlockSpec((1, C, TQ), lambda b, i: (b, 0, i))]
    if return_attention:
        out_shapes.append(jax.ShapeDtypeStruct((B, Np, Np), attn_dtype))
        out_specs.append(pl.BlockSpec((1, TQ, Np), lambda b, i: (b, i, 0)))

    # Megacore: split over batch when possible so each TC keeps its own K/V
    # resident instead of both TCs re-DMAing the same K/V blocks.
    dims = ("parallel", "arbitrary") if B >= 2 else ("arbitrary", "parallel")

    kernel = functools.partial(_self_attention_kernel, padded=padded,
                               store_attn=return_attention, exp_dtype=exp_dtype)

    results = pl.pallas_call(
        kernel,
        out_shape=tuple(out_shapes),
        grid_spec=pltpu.PrefetchScalarGridSpec(
            num_scalar_prefetch=0,
            grid=(B, Np // TQ),
            in_specs=in_specs,
            out_specs=out_specs,
        ),
        compiler_params=pltpu.CompilerParams(
            dimension_semantics=dims,
            vmem_limit_bytes=vmem_limit,
        ),
    )(*args)

    out_flat = results[0]
    if padded:
        out = out_flat[:, :, :N].reshape(B, C, H, W)
    else:
        out = out_flat.reshape(B, C, H, W)

    if not return_attention:
        return out, None

    attn = results[1]
    if padded and not return_padded_attention:
        # NOTE: this slice materializes an extra copy of the attention map; pass
        # return_padded_attention=True to avoid it when N % 128 != 0.
        attn = attn[:, :N, :N]
    return out, attn


def self_attention_ref(x_nchw, wq, bq, wk, bk, wv, bv, gamma):
    """Plain-JAX f32 reference mirroring the PyTorch forward."""
    B, C, H, W = x_nchw.shape
    N = H * W
    x = x_nchw.reshape(B, C, N)
    q = jnp.einsum('oc,bcn->bon', wq, x) + bq[None, :, None]   # (B, C8, N)
    k = jnp.einsum('oc,bcn->bon', wk, x) + bk[None, :, None]   # (B, C8, N)
    v = jnp.einsum('oc,bcn->bon', wv, x) + bv[None, :, None]   # (B, C,  N)
    energy = jnp.einsum('bcn,bcm->bnm', q, k)                  # (B, N, N)
    attn = jax.nn.softmax(energy, axis=-1)
    out = jnp.einsum('bcn,bmn->bcm', v, attn)                  # (B, C, N)
    out = gamma[0] * out + x
    return out.reshape(B, C, H, W), attn


if __name__ == "__main__":
    # Small shapes consistent with the module (in_dim >= 8 so in_dim // 8 >= 1).
    # H = W = 16 -> N = 256 (multiple of 128 -> lane-dense stores, no padding path).
    B, C, H, W = 2, 16, 16, 16
    C8 = C // 8

    key = jax.random.PRNGKey(0)
    k_x, k_wq, k_bq, k_wk, k_bk, k_wv, k_bv = jax.random.split(key, 7)

    x = jax.random.normal(k_x, (B, C, H, W), dtype=jnp.float32)

    # 1x1 conv weights are (out_ch, in_ch).
    wq = 0.1 * jax.random.normal(k_wq, (C8, C), dtype=jnp.float32)
    bq = 0.1 * jax.random.normal(k_bq, (C8,), dtype=jnp.float32)
    wk = 0.1 * jax.random.normal(k_wk, (C8, C), dtype=jnp.float32)
    bk = 0.1 * jax.random.normal(k_bk, (C8,), dtype=jnp.float32)
    wv = 0.1 * jax.random.normal(k_wv, (C, C), dtype=jnp.float32)
    bv = 0.1 * jax.random.normal(k_bv, (C,), dtype=jnp.float32)
    # Module inits gamma to 0 (out == x); use nonzero to exercise the path.
    gamma = jnp.array([0.5], dtype=jnp.float32)

    out, attn = self_attention_pallas(x, wq, bq, wk, bk, wv, bv, gamma)
    jax.block_until_ready((out, attn))

    out_ref, attn_ref = self_attention_ref(x, wq, bq, wk, bk, wv, bv, gamma)
    assert out.shape == (B, C, H, W) and attn.shape == (B, H * W, H * W)
    # bf16 MXU inputs + bf16 exp/attention writeback + approx reciprocal -> 1e-2 tol.
    assert jnp.allclose(out, out_ref, atol=1e-2, rtol=1e-2)
    assert jnp.allclose(attn.astype(jnp.float32), attn_ref, atol=1e-2, rtol=1e-2)

    # out-only path (attention map never materialized) must match too.
    out_only, attn_none = self_attention_pallas(x, wq, bq, wk, bk, wv, bv, gamma,
                                                return_attention=False)
    jax.block_until_ready(out_only)
    assert attn_none is None
    assert jnp.allclose(out_only, out_ref, atol=1e-2, rtol=1e-2)

    print("KERNEL_OK")
</pallas_src>

<mosaic_0001>
module attributes {stable_mosaic.version = 11 : i64} {
  func.func @_self_attention_kernel(%arg0: i32, %arg1: i32, %arg2: memref<1xf32, #tpu.memory_space<smem>>, %arg3: memref<1x16x256xf32, #tpu.memory_space<vmem>>, %arg4: memref<1x16x256xbf16, #tpu.memory_space<vmem>>, %arg5: memref<1x16x256xbf16, #tpu.memory_space<vmem>>, %arg6: memref<1x16x256xbf16, #tpu.memory_space<vmem>>, %arg7: memref<1x16x256xf32, #tpu.memory_space<vmem>>, %arg8: memref<1x256x256xbf16, #tpu.memory_space<vmem>>) attributes {dimension_semantics = [#tpu.dimension_semantics<parallel>, #tpu.dimension_semantics<arbitrary>], iteration_bounds = array<i64: 2, 1>, scalar_prefetch = 0 : i64, scratch_operands = 0 : i64, tpu.core_type = #tpu.core_type<tc>, window_params = [{transform_indices = @transform_0, window_bounds = array<i64: 1>}, {transform_indices = @transform_1, window_bounds = array<i64: 1, 16, 256>}, {transform_indices = @transform_2, window_bounds = array<i64: 1, 16, 256>}, {transform_indices = @transform_3, window_bounds = array<i64: 1, 16, 256>}, {transform_indices = @transform_4, window_bounds = array<i64: 1, 16, 256>}, {transform_indices = @transform_5, window_bounds = array<i64: 1, 16, 256>}, {transform_indices = @transform_6, window_bounds = array<i64: 1, 256, 256>}]} {
    %c0 = arith.constant 0 : index
    %c0_0 = arith.constant 0 : index
    %c0_1 = arith.constant 0 : index
    %0 = vector.load %arg4[%c0, %c0_0, %c0_1] : memref<1x16x256xbf16, #tpu.memory_space<vmem>>, vector<1x16x256xbf16>
    %1 = vector.shape_cast %0 : vector<1x16x256xbf16> to vector<16x256xbf16>
    %c0_2 = arith.constant 0 : index
    %c0_3 = arith.constant 0 : index
    %c0_4 = arith.constant 0 : index
    %2 = vector.load %arg5[%c0_2, %c0_3, %c0_4] : memref<1x16x256xbf16, #tpu.memory_space<vmem>>, vector<1x16x256xbf16>
    %3 = vector.shape_cast %2 : vector<1x16x256xbf16> to vector<16x256xbf16>
    %c0_5 = arith.constant 0 : index
    %c0_6 = arith.constant 0 : index
    %c0_7 = arith.constant 0 : index
    %4 = vector.load %arg6[%c0_5, %c0_6, %c0_7] : memref<1x16x256xbf16, #tpu.memory_space<vmem>>, vector<1x16x256xbf16>
    %5 = vector.shape_cast %4 : vector<1x16x256xbf16> to vector<16x256xbf16>
    %c0_8 = arith.constant 0 : index
    %c0_9 = arith.constant 0 : index
    %c0_10 = arith.constant 0 : index
    %6 = vector.load %arg3[%c0_8, %c0_9, %c0_10] : memref<1x16x256xf32, #tpu.memory_space<vmem>>, vector<1x16x256xf32>
    %7 = vector.shape_cast %6 : vector<1x16x256xf32> to vector<16x256xf32>
    %cst = arith.constant dense<0.000000e+00> : vector<256x256xf32>
    %8 = tpu.matmul %1, %3, %cst {dimension_numbers = #tpu.dot_dimension_numbers<[0], [0], [1], [1], [0, 1, 1, 1], [], []>} : vector<16x256xbf16>, vector<16x256xbf16>, vector<256x256xf32> -> vector<256x256xf32>
    %cst_11 = arith.constant dense<0xFF800000> : vector<256xf32>
    %9 = vector.multi_reduction <maximumf>, %8, %cst_11 [1] : vector<256x256xf32> to vector<256xf32>
    %10 = vector.shape_cast %9 : vector<256xf32> to vector<256x1xf32>
    %11 = vector.broadcast %10 : vector<256x1xf32> to vector<256x256xf32>
    %12 = arith.subf %8, %11 : vector<256x256xf32>
    %13 = arith.truncf %12 : vector<256x256xf32> to vector<256x256xbf16>
    %14 = math.exp %13 : vector<256x256xbf16>
    %15 = arith.extf %14 : vector<256x256xbf16> to vector<256x256xf32>
    %cst_12 = arith.constant dense<0.000000e+00> : vector<256xf32>
    %16 = vector.multi_reduction <add>, %15, %cst_12 [1] : vector<256x256xf32> to vector<256xf32>
    %17 = vector.shape_cast %16 : vector<256xf32> to vector<256x1xf32>
    %18 = tpu.reciprocal %17 {approx = true} : vector<256x1xf32> -> vector<256x1xf32>
    %19 = arith.truncf %18 : vector<256x1xf32> to vector<256x1xbf16>
    %20 = vector.broadcast %19 : vector<256x1xbf16> to vector<256x256xbf16>
    %21 = arith.mulf %14, %20 : vector<256x256xbf16>
    %c0_13 = arith.constant 0 : index
    %c0_14 = arith.constant 0 : index
    %c0_15 = arith.constant 0 : index
    %22 = vector.load %arg8[%c0_13, %c0_14, %c0_15] : memref<1x256x256xbf16, #tpu.memory_space<vmem>>, vector<1x256x256xbf16>
    %23 = vector.shape_cast %22 : vector<1x256x256xbf16> to vector<256x256xbf16>
    %24 = vector.shape_cast %21 : vector<256x256xbf16> to vector<1x256x256xbf16>
    tpu.vector_store %arg8[%c0_13, %c0_14, %c0_15], %24 {strides = array<i32>} : memref<1x256x256xbf16, #tpu.memory_space<vmem>>, vector<1x256x256xbf16>,
    %cst_16 = arith.constant dense<0.000000e+00> : vector<16x256xf32>
    %25 = tpu.matmul %5, %21, %cst_16 {dimension_numbers = #tpu.dot_dimension_numbers<[1], [1], [0], [0], [0, 0, 1, 0], [], []>} : vector<16x256xbf16>, vector<256x256xbf16>, vector<16x256xf32> -> vector<16x256xf32>
    %c0_17 = arith.constant 0 : index
    %26 = memref.load %arg2[%c0_17] : memref<1xf32, #tpu.memory_space<smem>>
    %27 = vector.broadcast %26 : f32 to vector<16x256xf32>
    %28 = arith.mulf %27, %25 : vector<16x256xf32>
    %29 = arith.addf %28, %7 : vector<16x256xf32>
    %c0_18 = arith.constant 0 : index
    %c0_19 = arith.constant 0 : index
    %c0_20 = arith.constant 0 : index
    %30 = vector.load %arg7[%c0_18, %c0_19, %c0_20] : memref<1x16x256xf32, #tpu.memory_space<vmem>>, vector<1x16x256xf32>
    %31 = vector.shape_cast %30 : vector<1x16x256xf32> to vector<16x256xf32>
    %32 = vector.shape_cast %29 : vector<16x256xf32> to vector<1x16x256xf32>
    tpu.vector_store %arg7[%c0_18, %c0_19, %c0_20], %32 {strides = array<i32>} : memref<1x16x256xf32, #tpu.memory_space<vmem>>, vector<1x16x256xf32>,
    return
  }
  func.func @transform_0(%arg0: i32, %arg1: i32) -> i32 {
    %c0_i32 = arith.constant 0 : i32
    %c0_i32_0 = arith.constant 0 : i32
    return %c0_i32 : i32
  }
  func.func @transform_1(%arg0: i32, %arg1: i32) -> (i32, i32, i32) {
    %c0_i32 = arith.constant 0 : i32
    %c0_i32_0 = arith.constant 0 : i32
    return %arg0, %c0_i32, %arg1 : i32, i32, i32
  }
  func.func @transform_2(%arg0: i32, %arg1: i32) -> (i32, i32, i32) {
    %c0_i32 = arith.constant 0 : i32
    %c0_i32_0 = arith.constant 0 : i32
    return %arg0, %c0_i32, %arg1 : i32, i32, i32
  }
  func.func @transform_3(%arg0: i32, %arg1: i32) -> (i32, i32, i32) {
    %c0_i32 = arith.constant 0 : i32
    %c0_i32_0 = arith.constant 0 : i32
    %c0_i32_1 = arith.constant 0 : i32
    return %arg0, %c0_i32, %c0_i32_0 : i32, i32, i32
  }
  func.func @transform_4(%arg0: i32, %arg1: i32) -> (i32, i32, i32) {
    %c0_i32 = arith.constant 0 : i32
    %c0_i32_0 = arith.constant 0 : i32
    %c0_i32_1 = arith.constant 0 : i32
    return %arg0, %c0_i32, %c0_i32_0 : i32, i32, i32
  }
  func.func @transform_5(%arg0: i32, %arg1: i32) -> (i32, i32, i32) {
    %c0_i32 = arith.constant 0 : i32
    %c0_i32_0 = arith.constant 0 : i32
    return %arg0, %c0_i32, %arg1 : i32, i32, i32
  }
  func.func @transform_6(%arg0: i32, %arg1: i32) -> (i32, i32, i32) {
    %c0_i32 = arith.constant 0 : i32
    %c0_i32_0 = arith.constant 0 : i32
    return %arg0, %arg1, %c0_i32 : i32, i32, i32
  }
}

</mosaic_0001>

<bundles_post_ra>
// kernel: tpu_custom_call.1
= control target key start
LH: loop header
LB: loop body
LE: loop exit
PB: predicated region body
PF: predicated region fallthrough
CT: control target
= control target key end

     0   :  { %s3785_s0 = inlined_call_operand.<no memory space> [shape: f32[1], index: 0, kind: input, shape index: {}]   ;;  %s3786_s1 = inlined_call_operand.hbm [shape: f32[2,16,256], index: 1, kind: input, shape index: {}]   ;;  %s3787_s2 = inlined_call_operand.hbm [shape: bf16[2,16,256], index: 2, kind: input, shape index: {}]   ;;  %s3788_s3 = inlined_call_operand.hbm [shape: bf16[2,16,256], index: 3, kind: input, shape index: {}]   ;;  %s3789_s4 = inlined_call_operand.hbm [shape: bf16[2,16,256], index: 4, kind: input, shape index: {}]   ;;  %s3790_s5 = inlined_call_operand.hbm [shape: f32[2,16,256], index: 5, kind: output, shape index: {0}]   ;;  %s3791_s6 = inlined_call_operand.hbm [shape: bf16[2,256,256], index: 6, kind: output, shape index: {1}]  }
   0x1   :  { %3867 = sst [smem:[#allocation47_spill]] %s3786_s1 }
   0x2   :  { %3868 = sst [smem:[#allocation48_spill]] %s3787_s2 }
   0x3   :  { %3869 = sst [smem:[#allocation49_spill]] %s3790_s5 }
   0x4   :  { %12 = sst [smem:[#allocation2]] %s3785_s0 }
   0x5   :  { %13 = vsyncpa [#allocation4], 0 }
   0x6   :  { %15 = vsyncpa [#allocation4 + $0x1], 0 }
   0x7   :  { %16 = vsyncpa [#allocation7], 0 }
   0x8   :  { %18 = vsyncpa [#allocation7 + $0x1], 0 }
   0x9   :  { %19 = vsyncpa [#allocation10], 0 }
   0xa   :  { %21 = vsyncpa [#allocation10 + $0x1], 0 }
   0xb   :  { %22 = vsyncpa [#allocation5], 0 }
   0xc   :  { %24 = vsyncpa [#allocation5 + $0x1], 0 }
   0xd   :  { %25 = vsyncpa [#allocation13], 0 }
   0xe   :  { %27 = vsyncpa [#allocation13 + $0x1], 0  ;;  %s2666_s23 = smov 0   ;;  %s2668_s24 = smov 0  }
   0xf   :  { %s2670_s25 = smov 0   ;;  %s2672_s26 = smov 0  }
  0x10   :  { %s2674_s27 = smov 0   ;;  %s2676_s0 = smov 0  }
  0x11 LB: > { %3870 = sst [smem:[#allocation19_spill]] %s2598_s23  ;;  %s2697_s28 = sadd.s32 4294967295, %s2618_s0   ;;  %s2618_s0 = sphi %s2676_s0, %s33_s0   ;;  %s2614_s27 = sphi %s2674_s27, %s3978_s27   ;;  %s2610_s26 = sphi %s2672_s26, %s3977_s26   ;;  %s2606_s25 = sphi %s2670_s25, %s3976_s25   ;;  %s2602_s24 = sphi %s2668_s24, %s3980_s24   ;;  %s2598_s23 = sphi %s2666_s23, %s3979_s23  }
  0x12   : > { %3871 = sst [smem:[#allocation20_spill]] %s2606_s25  ;;  %s1993_s29 = sadd.s32 4294967294, %s2618_s0  }
  0x13   : > { %3872 = sst [smem:[#allocation21_spill]] %s2614_s27  ;;  %s45_s30 = sadd.s32 1, %s2614_s27 }
  0x14   : > { %3873 = sst [smem:[#allocation22_spill]] %s2618_s0  ;;  %s75_s7 = sadd.s32 1, %s2606_s25 }
  0x15   : > { %p47_p0 = scmp.ge.s32.totalorder %s45_s30, 2  ;;  %p82_p1 = scmp.ne.s32.totalorder %s2606_s25, %s2602_s24 }
  0x16   : > { %p83_p2 = scmp.eq.s32.totalorder %s2618_s0, 0  ;;  %p88_p3 = scmp.ne.s32.totalorder %s2602_s24, %s2598_s23 }
  0x17   : > { %s3982_s30 = smov (%p47_p0, %s45_s30), 0  ;;  %p89_p5 = scmp.eq.s32.totalorder %s2697_s28, 0 }
  0x18   : > { %3874 = sst [smem:[#allocation23_spill]] %s3982_s30  ;;  %p2709_p4 = por %p83_p2, %p82_p1 }
  0x19   : > { %s70_s9 = ssub.s32 %s2614_s27, %s3982_s30  ;;  %p194_p6 = scmp.eq.s32.totalorder %s2697_s28, 1 }
  0x1a   : > { %p73_p7 = scmp.eq.s32.totalorder %s70_s9, 0  ;;  %p2717_p8 = por %p89_p5, %p88_p3 }
  0x1b   : > { %p2721_p9 = por %p194_p6, %p82_p1  ;;  %p200_p10 = scmp.eq.s32.totalorder %s1993_s29, 1 }
  0x1c   : > { %s2726_s12 = scalar_select %p73_p7, %s2606_s25, %s75_s7  }
  0x1d   : > { %p2728_p11 = por %p200_p10, %p88_p3  ;;  %p1995_p12 = scmp.ge.s32.totalorder %s2618_s0, 2 }
  0x1e   : > { %3878 = sst [smem:[#allocation24_spill]] %s2726_s12  ;;  %p2125_p13 = scmp.lt.s32.totalorder %s2618_s0, 2 }
  0x1f   : > { %s3879_s13 = scalar_select %p2728_p11, 1, 0 }
  0x20   : > { %s2735_s14 = sand.u32 1, %s2606_s25   ;;  %s275_s15 = sand.u32 1, %s2618_s0  }
  0x21   : > { %3880 = sst [smem:[#allocation25_spill]] %s3879_s13  ;;  %s2739_s16 = sshll.u32 %s2735_s14, 4 }
  0x22   : > { %p2743_p0 = pnand %p2125_p13, %p2709_p4  ;;  %s2748_s18 = sshll.u32 %s2614_s27, 4 }
  0x23   : > { %s3882_s2 = sld [smem:[#allocation48_spill]]  ;;  %s279_s29 = scalar_lea.vmem [#allocation6], %s2739_s16 }
  0x24   : > { %s289_s7 = sshll.u32 %s279_s29, 4  ;;  %s2755_s8 = scalar_lea.sflag [#allocation7], %s275_s15  ;;  %s290_s7 = int_to_ptr.vmem [resolvable:$true] %s289_s7 }
  0x25   : > { %s3794_s9 = smov 128   ;;  %s3796_s30 = smov 8  }
  0x26   : > { %p2008_p1 = scmp.ge.s32.totalorder %s2618_s0, 1  ;;  %p341_p2 = scmp.lt.s32.totalorder %s2618_s0, 3 }
  0x27   : > { %s1996_s20 = sshll.u32 %s2735_s14, 5  ;;  %s2079_s15 = sshll.u32 %s2614_s27, 5 }
  0x28   : > { %p2765_p3 = pnand %p2008_p1, %p341_p2  ;;  %s3884_s1 = sld [smem:[#allocation47_spill]] }
  0x29   : > { %s286_s21 = scalar_lea.hbm %s3882_s2, %s2748_s18  ;;  %s255_s25 = scalar_lea.vmem [#allocation3], %s1996_s20 }
  0x2a   : > { %s287_s22 = sshll.u32 %s286_s21, 4  ;;  %s303_s29 = scalar_lea.vmem [#allocation8], %s2739_s16  ;;  %s288_s22 = int_to_ptr.hbm [resolvable:$true] %s287_s22 }
  0x2b   : > { %2111 = dma.hbm_to_vmem [thread:$0]  (!%p2743_p0), %s288_s22, 256, %s290_s7, %s2755_s8, %s3794_s9, %s3794_s9, %s3796_s30  }
  0x2c   : > { %s265_s22 = sshll.u32 %s255_s25, 4  ;;  %s252_s7 = scalar_lea.sflag [#allocation4], %s2735_s14  ;;  %s266_s22 = int_to_ptr.vmem [resolvable:$true] %s265_s22 }
  0x2d   : > { %s2622_s9 = smov 256   ;;  %s2623_s30 = smov 16  }
  0x2e   : > { %s262_s2 = scalar_lea.hbm %s3884_s1, %s2079_s15  ;;  %s308_s15 = scalar_lea.hbm %s3788_s3, %s2748_s18 }
  0x2f   : > { %s263_s12 = sshll.u32 %s262_s2, 4  ;;  %s309_s21 = sshll.u32 %s308_s15, 4  ;;  %s264_s12 = int_to_ptr.hbm [resolvable:$true] %s263_s12  ;;  %s310_s21 = int_to_ptr.hbm [resolvable:$true] %s309_s21 }
  0x30   : > { %2108 = dma.hbm_to_vmem [thread:$0]  (!%p2743_p0), %s264_s12, 512, %s266_s22, %s252_s7, %s2622_s9, %s2622_s9, %s2623_s30  }
  0x31   : > { %s311_s2 = sshll.u32 %s303_s29, 4  ;;  %s3885_s25 = smov 8   ;;  %s312_s2 = int_to_ptr.vmem [resolvable:$true] %s311_s2 }
  0x32   : > { %s3886_s20 = smov 128   ;;  %s330_s23 = scalar_lea.hbm %s3789_s4, %s2748_s18 }
  0x33   : > { %2114 = dma.hbm_to_vmem [thread:$0]  (!%p2743_p0), %s310_s21, 256, %s312_s2, %s2755_s8, %s3886_s20, %s3886_s20, %s3885_s25  }
  0x34   : > { %s325_s5 = scalar_lea.vmem [#allocation9], %s2739_s16  ;;  %s331_s12 = sshll.u32 %s330_s23, 4  ;;  %s332_s12 = int_to_ptr.hbm [resolvable:$true] %s331_s12 }
  0x35   : > { %s333_s30 = sshll.u32 %s325_s5, 4  ;;  %s322_s27 = scalar_lea.sflag [#allocation10], %s2735_s14  ;;  %s334_s30 = int_to_ptr.vmem [resolvable:$true] %s333_s30 }
  0x36   : > { %2117 = dma.hbm_to_vmem [thread:$0]  (!%p2743_p0), %s332_s12, 256, %s334_s30, %s322_s27, %s3886_s20, %s3886_s20, %s3885_s25  }
  0x37   : > { %345 = sbr.rel (%p2765_p3) target bundleno = 1110 (0x456), region = 40 }
  0x3c   : > { %s2802_s0 = sand.u32 1, %s2602_s24  }
  0x3d   : > { %s2009_s1 = sshll.u32 %s2802_s0, 5  ;;  %s348_s5 = scalar_lea.sflag [#allocation4], %s2802_s0 }
  0x3e   : > { %s2808_s23 = scalar_lea.vmem [#allocation3], %s2009_s1 }
  0x3f   : > { %2577 = dma.done.wait (%p2717_p8), %s348_s5, 512  }
  0x40   : > { %2579 = vsyncadd (%p2717_p8), %s348_s5, 4294966784  ;;  %s357_s13 = sand.u32 1, %s2697_s28   ;;  %s2010_s14 = sshll.u32 %s2802_s0, 4 }
  0x41   : > { %s358_s16 = scalar_lea.sflag [#allocation7], %s357_s13  ;;  %s361_s17 = scalar_lea.vmem [#allocation6], %s2010_s14 }
  0x42   : > { %2581 = dma.done.wait (%p2717_p8), %s358_s16, 512  }
  0x43   : > { %2583 = vsyncadd (%p2717_p8), %s358_s16, 4294966784  ;;  %s371_s18 = scalar_lea.vmem [#allocation8], %s2010_s14  ;;  %s378_s8 = scalar_lea.sflag [#allocation10], %s2802_s0 }
  0x44   : > { %s2821_s9 = scalar_lea.vmem [#allocation9], %s2010_s14 }
  0x45   : > { %2585 = dma.done.wait (%p2717_p8), %s378_s8, 256  }
  0x46   : > { %2587 = vsyncadd (%p2717_p8), %s378_s8, 4294967040  ;;  %v2083_v0 = vld [vmem:[%s361_s17 + $0x4] sm:$0xf]  ;;  %v2017_v1 = vld [vmem:[%s361_s17] sm:$0xf]  ;;  %vm490_vm0 = vcmask 130048  }
  0x47   : > { %v2019_v2 = vld [vmem:[%s361_s17 + $0x8] sm:$0xf0]  ;;  %v2084_v3 = vld [vmem:[%s361_s17 + $0x4] sm:$0xf0]  ;;  %v2025_v5 = vld [vmem:[%s371_s18] sm:$0xf] }
  0x48   : > { %v2022_v4 = vor.u32 %v2083_v0, %v2019_v2  ;;  %v2086_v6 = vld [vmem:[%s371_s18 + $0x4] sm:$0xf0]  ;;  %v2018_v7 = vor.u32 %v2084_v3, %v2017_v1  ;;  %v2085_v9 = vld [vmem:[%s371_s18 + $0x4] sm:$0xf]  ;;  %v2027_v10 = vld [vmem:[%s371_s18 + $0x8] sm:$0xf0] }
  0x49   : > { %v2026_v8 = vor.u32 %v2086_v6, %v2025_v5  ;;  %v2030_v11 = vor.u32 %v2085_v9, %v2027_v10  ;;  %s2014_s28 = sshll.u32 %s2802_s0, 8  ;;  %s2090_s19 = sshll.u32 %s2610_s26, 8 }
  0x4a   : > { %456 = vxpose.binary.xlu0.c.b16.start.end [1/2] (short) %v2022_v4, %v2018_v7, 128  ;;  %s3438_s10 = scalar_lea.vmem [#allocation12], %s2014_s28  ;;  %s1796_s15 = scalar_lea.hbm %s3791_s6, %s2090_s19 }
  0x4b   : > { %546 = vmatpush.bf16.msra.mxu0 %v2026_v8  ;;  %635 = vmatpush.bf16.msra.mxu1 %v2030_v11  ;;  %s1797_s21 = sshll.u32 %s3438_s10, 4  ;;  %s1799_s29 = sshll.u32 %s1796_s15, 4  ;;  %s1798_s21 = int_to_ptr.vmem [resolvable:$true] %s1797_s21  ;;  %s1800_s29 = int_to_ptr.hbm [resolvable:$true] %s1799_s29 }
  0x4c   : > { %2092 = vmatpush.bf16.msra.mxu3 %v2030_v11  ;;  %2091 = vmatpush.bf16.msra.mxu2 %v2026_v8  ;;  %s1763_s2 = scalar_lea.sflag [#allocation13], %s2802_s0  ;;  %s2510_s25 = sshra.s32 %s1800_s29, 4  ;;  %s2511_s25 = int_to_ptr.hbm [resolvable:$true] %s2510_s25 }
  0x4d   : > { %s2512_s20 = scalar_lea.hbm %s2511_s25, 256  ;;  %s2516_s27 = scalar_lea.hbm %s3791_s6, 512 }
  0x4e   : > { %p2513_p4 = scmp.ne.s32.totalorder %s2511_s25, %s2512_s20  ;;  %p2517_p7 = scmp.lt.s32.totalorder %s2511_s25, %s3791_s6 }
  0x4f   : > { %p2518_p8 = scmp.lt.s32.totalorder %s2516_s27, %s2512_s20 }
  0x50   : > { %p2514_p5 = pnand %p2513_p4, %p2721_p9 }
  0x51   : > { %p2519_p10 = por %p2518_p8, %p2517_p7 }
  0x52   : > { %p2515_p6 = pneg %p2514_p5 }
  0x54   : > { %p2520_p13 = pnand %p2519_p10, %p2515_p6 }
  0xf6   : > { %v464_v12 = vpop.trf.xlu0 }
  0xf7   : > { %2031 = vmatmul.msk.bf16.vlgmr.msra.gmra.mxu0 %vm490_vm0, %v464_v12  ;;  %2047 = vmatmul.msk.bf16.vlgmr.msra.gmra.mxu1 %vm490_vm0, %v464_v12 }
  0xfe   : > { %v465_v13 = vpop.trf.xlu0 }
 0x106   : > { %v466_v14 = vpop.trf.xlu0 }
 0x107   : > { %2032 = vmatmul.msk.bf16.gmra.mxu0 %vm490_vm0, %v466_v14  ;;  %2048 = vmatmul.msk.bf16.gmra.mxu1 %vm490_vm0, %v466_v14 }
 0x10e   : > { %v467_v15 = vpop.trf.xlu0 }
 0x116   : > { %v468_v16 = vpop.trf.xlu0 }
 0x117   : > { %2033 = vmatmul.msk.bf16.gmra.mxu0 %vm490_vm0, %v468_v16  ;;  %2049 = vmatmul.msk.bf16.gmra.mxu1 %vm490_vm0, %v468_v16 }
 0x11e   : > { %v469_v17 = vpop.trf.xlu0 }
 0x126   : > { %v470_v18 = vpop.trf.xlu0 }
 0x127   : > { %2034 = vmatmul.msk.bf16.gmra.mxu0 %vm490_vm0, %v470_v18  ;;  %2050 = vmatmul.msk.bf16.gmra.mxu1 %vm490_vm0, %v470_v18 }
 0x12e   : > { %v471_v19 = vpop.trf.xlu0 }
 0x12f   : > { %2058 = vmatmul.msk.bf16.vlgmr.msra.gmra.mxu3 %vm490_vm0, %v471_v19 }
 0x136   : > { %v472_v20 = vpop.trf.xlu0 }
 0x137   : > { %2035 = vmatmul.msk.bf16.gmra.mxu0 %vm490_vm0, %v472_v20  ;;  %2051 = vmatmul.msk.bf16.gmra.mxu1 %vm490_vm0, %v472_v20 }
 0x13e   : > { %v473_v21 = vpop.trf.xlu0 }
 0x13f   : > { %2043 = vmatmul.msk.bf16.vlgmr.msra.gmra.mxu2 %vm490_vm0, %v473_v21  ;;  %2059 = vmatmul.msk.bf16.gmra.mxu3 %vm490_vm0, %v473_v21 }
 0x146   : > { %v474_v22 = vpop.trf.xlu0 }
 0x147   : > { %2036 = vmatmul.msk.bf16.gmra.mxu0 %vm490_vm0, %v474_v22  ;;  %2052 = vmatmul.msk.bf16.gmra.mxu1 %vm490_vm0, %v474_v22 }
 0x14e   : > { %v475_v23 = vpop.trf.xlu0 }
 0x14f   : > { %2044 = vmatmul.msk.bf16.gmra.mxu2 %vm490_vm0, %v475_v23  ;;  %2060 = vmatmul.msk.bf16.gmra.mxu3 %vm490_vm0, %v475_v23 }
 0x156   : > { %v476_v24 = vpop.trf.xlu0 }
 0x157   : > { %2037 = vmatmul.msk.bf16.gmra.mxu0 %vm490_vm0, %v476_v24  ;;  %2053 = vmatmul.msk.bf16.gmra.mxu1 %vm490_vm0, %v476_v24 }
 0x15e   : > { %v477_v25 = vpop.trf.xlu0 }
 0x15f   : > { %2045 = vmatmul.msk.bf16.gmra.mxu2 %vm490_vm0, %v477_v25  ;;  %2061 = vmatmul.msk.bf16.gmra.mxu3 %vm490_vm0, %v477_v25 }
 0x166   : > { %v478_v26 = vpop.trf.xlu0 }
 0x167   : > { %2038 = vmatmul.msk.bf16.gmra.mxu0 %vm490_vm0, %v478_v26  ;;  %2054 = vmatmul.msk.bf16.gmra.mxu1 %vm490_vm0, %v478_v26 }
 0x16e   : > { %v479_v31 = vpop.trf.xlu0 }
 0x16f   : > { %2046 = vmatmul.msk.bf16.gmra.mxu2 %vm490_vm0, %v479_v31  ;;  %2062 = vmatmul.msk.bf16.gmra.mxu3 %vm490_vm0, %v479_v31 }
 0x174   : > { %v2850_v27 = vpop.f32.mrf.mxu0  ;;  %v2852_v28 = vpop.f32.mrf.mxu1 }
 0x175   : > { %3887 = vst [vmem:[#allocation26_spill] sm:$0xff] %v2850_v27 }
 0x176   : > { %3888 = vst [vmem:[#allocation27_spill] sm:$0xff] %v2852_v28 }
 0x177   : > { %2039 = vmatmul.msk.bf16.gmra.mxu0 %vm490_vm0, %v465_v13  ;;  %2055 = vmatmul.msk.bf16.gmra.mxu1 %vm490_vm0, %v465_v13 }
 0x17c   : > { %v2856_v29 = vpop.f32.mrf.mxu0  ;;  %v2858_v30 = vpop.f32.mrf.mxu1 }
 0x17d   : > { %3889 = vst [vmem:[#allocation28_spill] sm:$0xff] %v2858_v30  ;;  %v720_v31 = vmax.f32 %v2856_v29, %v2858_v30 }
 0x184   : > { %v2862_v32 = vpop.f32.mrf.mxu0  ;;  %v2864_v33 = vpop.f32.mrf.mxu1 }
 0x185   : > { %3890 = vst [vmem:[#allocation29_spill] sm:$0xff] %v2862_v32 }
 0x186   : > { %3891 = vst [vmem:[#allocation30_spill] sm:$0xff] %v2864_v33 }
 0x187   : > { %2040 = vmatmul.msk.bf16.gmra.mxu0 %vm490_vm0, %v467_v15  ;;  %2056 = vmatmul.msk.bf16.gmra.mxu1 %vm490_vm0, %v467_v15 }
 0x18c   : > { %v2868_v34 = vpop.f32.mrf.mxu0  ;;  %v2870_v35 = vpop.f32.mrf.mxu1 }
 0x18d   : > { %v726_v23 = vmax.f32 %v2868_v34, %v2870_v35 }
 0x194   : > { %v2872_v36 = vpop.f32.mrf.mxu0  ;;  %v2874_v37 = vpop.f32.mrf.mxu1 }
 0x195   : > { %v729_v24 = vmax.f32 %v2872_v36, %v2874_v37 }
 0x197   : > { %2041 = vmatmul.msk.bf16.gmra.mxu0 %vm490_vm0, %v469_v17  ;;  %2057 = vmatmul.msk.bf16.gmra.mxu1 %vm490_vm0, %v469_v17 }
 0x19c   : > { %v2878_v38 = vpop.f32.mrf.mxu0  ;;  %v2880_v39 = vpop.f32.mrf.mxu1 }
 0x19d   : > { %v732_v17 = vmax.f32 %v2878_v38, %v2880_v39 }
 0x1a4   : > { %v2882_v40 = vpop.f32.mrf.mxu0  ;;  %v2884_v41 = vpop.f32.mrf.mxu1 }
 0x1a5   : > { %v735_v18 = vmax.f32 %v2882_v40, %v2884_v41 }
 0x1a7   : > { %2042 = vmatmul.msk.bf16.gmra.mxu0 %vm490_vm0, %v471_v19 }
 0x1ac   : > { %v2887_v42 = vpop.f32.mrf.mxu0  ;;  %v2889_v43 = vpop.f32.mrf.mxu1 }
 0x1ad   : > { %v738_v10 = vmax.f32 %v2887_v42, %v2889_v43 }
 0x1b2   : > { %v2895_v46 = vpop.f32.mrf.mxu3 }
 0x1b3   : > { %3892 = vst [vmem:[#allocation31_spill] sm:$0xff] %v2895_v46 }
 0x1b4   : > { %v2891_v44 = vpop.f32.mrf.mxu0  ;;  %v2893_v45 = vpop.f32.mrf.mxu1 }
 0x1b5   : > { %v741_v11 = vmax.f32 %v2891_v44, %v2893_v45 }
 0x1ba   : > { %v2901_v49 = vpop.f32.mrf.mxu3 }
 0x1bb   : > { %3893 = vst [vmem:[#allocation32_spill] sm:$0xff] %v2901_v49 }
 0x1bc   : > { %v2897_v47 = vpop.f32.mrf.mxu0  ;;  %v2899_v48 = vpop.f32.mrf.mxu1 }
 0x1bd   : > { %v744_v5 = vmax.f32 %v2897_v47, %v2899_v48 }
 0x1c2   : > { %v2907_v52 = vpop.f32.mrf.mxu2  ;;  %v2909_v53 = vpop.f32.mrf.mxu3 }
 0x1c4   : > { %v2903_v50 = vpop.f32.mrf.mxu0  ;;  %v2905_v51 = vpop.f32.mrf.mxu1 }
 0x1c5   : > { %v747_v6 = vmax.f32 %v2903_v50, %v2905_v51 }
 0x1ca   : > { %v2921_v59 = vpop.f32.mrf.mxu2  ;;  %v2923_v60 = vpop.f32.mrf.mxu3 }
 0x1cb   : > { %v792_v20 = vmax.f32 %v2921_v59, %v2923_v60 }
 0x1cc   : > { %v2911_v54 = vpop.f32.mrf.mxu0  ;;  %v2913_v55 = vpop.f32.mrf.mxu1 }
 0x1cd   : > { %v750_v63 = vmax.f32 %v2911_v54, %v2913_v55 }
 0x1d2   : > { %v2933_v1 = vpop.f32.mrf.mxu2  ;;  %v2935_v2 = vpop.f32.mrf.mxu3 }
 0x1d3   : > { %v795_v21 = vmax.f32 %v2933_v1, %v2935_v2 }
 0x1d4   : > { %v2915_v56 = vpop.f32.mrf.mxu0  ;;  %v2917_v57 = vpop.f32.mrf.mxu1 }
 0x1d5   : > { %v753_v58 = vmax.f32 %v2915_v56, %v2917_v57 }
 0x1d7   : > { %754 = vmax.xlane.f32.xlu1 %v753_v58  ;;  %v789_v58 = vmax.f32 %v2907_v52, %v2909_v53 }
 0x1da   : > { %v2947_v8 = vpop.f32.mrf.mxu2  ;;  %v2949_v9 = vpop.f32.mrf.mxu3 }
 0x1db   : > { %v798_v15 = vmax.f32 %v2947_v8, %v2949_v9 }
 0x1dc   : > { %v2925_v61 = vpop.f32.mrf.mxu0  ;;  %v2927_v62 = vpop.f32.mrf.mxu1 }
 0x1dd   : > { %v756_v0 = vmax.f32 %v2925_v61, %v2927_v62 }
 0x1df   : > { %751 = vmax.xlane.f32.xlu1 %v750_v63  ;;  %757 = vmax.xlane.f32.xlu2 %v756_v0 }
 0x1e2   : > { %v2955_v12 = vpop.f32.mrf.mxu2  ;;  %v2957_v13 = vpop.f32.mrf.mxu3 }
 0x1e3   : > { %v801_v14 = vmax.f32 %v2955_v12, %v2957_v13 }
 0x1e4   : > { %v2937_v3 = vpop.f32.mrf.mxu0  ;;  %v2939_v4 = vpop.f32.mrf.mxu1 }
 0x1e5   : > { %v759_v7 = vmax.f32 %v2937_v3, %v2939_v4 }
 0x1e7   : > { %745 = vmax.xlane.f32.xlu1 %v744_v5  ;;  %748 = vmax.xlane.f32.xlu2 %v747_v6 }
 0x1e8   : > { %760 = vmax.xlane.f32.xlu0 %v759_v7  ;;  %v723_v7 = vmax.f32 %v2862_v32, %v2864_v33 }
 0x1ea   : > { %v2989_v63 = vpop.f32.mrf.mxu2  ;;  %v2991_v0 = vpop.f32.mrf.mxu3 }
 0x1ec   : > { %v2963_v16 = vpop.f32.mrf.mxu0  ;;  %v2975_v22 = vpop.f32.mrf.mxu1 }
 0x1ef   : > { %739 = vmax.xlane.f32.xlu1 %v738_v10  ;;  %742 = vmax.xlane.f32.xlu2 %v741_v11  ;;  %v804_v10 = vmax.f32 %v2989_v63, %v2991_v0 }
 0x1f2   : > { %v3001_v11 = vpop.f32.mrf.mxu2 }
 0x1f4   : > { %v2969_v19 = vpop.f32.mrf.mxu0  ;;  %v2983_v26 = vpop.f32.mrf.mxu1 }
 0x1f5   : > { %3894 = vst [vmem:[#allocation33_spill] sm:$0xff] %v2969_v19 }
 0x1f6   : > { %3896 = vst [vmem:[#allocation35_spill] sm:$0xff] %v2983_v26 }
 0x1f7   : > { %799 = vmax.xlane.f32.xlu1 %v798_v15  ;;  %802 = vmax.xlane.f32.xlu2 %v801_v14  ;;  %v3003_v14 = vpop.f32.mrf.mxu3 }
 0x1fc   : > { %v2981_v25 = vpop.f32.mrf.mxu0  ;;  %v2995_v6 = vpop.f32.mrf.mxu1 }
 0x1fd   : > { %3895 = vst [vmem:[#allocation34_spill] sm:$0xff] %v2981_v25 }
 0x1fe   : > { %3898 = vst [vmem:[#allocation37_spill] sm:$0xff] %v2995_v6 }
 0x1ff   : > { %733 = vmax.xlane.f32.xlu1 %v732_v17  ;;  %736 = vmax.xlane.f32.xlu2 %v735_v18  ;;  %v762_v17 = vmax.f32 %v2963_v16, %v2975_v22 }
 0x204   : > { %v2993_v5 = vpop.f32.mrf.mxu0  ;;  %v3009_v18 = vpop.f32.mrf.mxu1 }
 0x205   : > { %3897 = vst [vmem:[#allocation36_spill] sm:$0xff] %v2993_v5 }
 0x206   : > { %3900 = vst [vmem:[#allocation39_spill] sm:$0xff] %v3009_v18 }
 0x207   : > { %793 = vmax.xlane.f32.xlu1 %v792_v20  ;;  %796 = vmax.xlane.f32.xlu2 %v795_v21  ;;  %v717_v20 = vmax.f32 %v2850_v27, %v2852_v28  ;;  %v3013_v21 = vpop.f32.mrf.mxu2  ;;  %v771_v27 = vmax.f32 %v2993_v5, %v3009_v18 }
 0x20c   : > { %v3005_v15 = vpop.f32.mrf.mxu0 }
 0x20d   : > { %3899 = vst [vmem:[#allocation38_spill] sm:$0xff] %v3005_v15 }
 0x20f   : > { %727 = vmax.xlane.f32.xlu1 %v726_v23  ;;  %730 = vmax.xlane.f32.xlu2 %v729_v24  ;;  %v3015_v23 = vpop.f32.mrf.mxu3  ;;  %v807_v24 = vmax.f32 %v3001_v11, %v3003_v14 }
 0x217   : > { %721 = vmax.xlane.f32.xlu1 %v720_v31  ;;  %790 = vmax.xlane.f32.xlu2 %v789_v58  ;;  %v810_v31 = vmax.f32 %v3013_v21, %v3015_v23  ;;  %v3021_v58 = vpop.f32.mrf.mxu0 }
 0x218   : > { %3901 = vst [vmem:[#allocation40_spill] sm:$0xff] %v3021_v58 }
 0x21f   : > { %724 = vmax.xlane.f32.xlu2 %v723_v7  ;;  %805 = vmax.xlane.f32.xlu1 %v804_v10  ;;  %v3023_v7 = vpop.f32.mrf.mxu1  ;;  %v765_v10 = vmax.f32 %v2969_v19, %v2983_v26 }
 0x220   : > { %3902 = vst [vmem:[#allocation41_spill] sm:$0xff] %v3023_v7  ;;  %v774_v33 = vmax.f32 %v3005_v15, %v3023_v7 }
 0x227   : > { %718 = vmax.xlane.f32.xlu2 %v717_v20  ;;  %763 = vmax.xlane.f32.xlu1 %v762_v17  ;;  %v768_v17 = vmax.f32 %v2981_v25, %v2995_v6  ;;  %v3029_v20 = vpop.f32.mrf.mxu0  ;;  %v3031_v28 = vpop.f32.mrf.mxu1 }
 0x228   : > { %3903 = vst [vmem:[#allocation42_spill] sm:$0xff] %v3029_v20 }
 0x229   : > { %3904 = vst [vmem:[#allocation43_spill] sm:$0xff] %v3031_v28 }
 0x22f   : > { %808 = vmax.xlane.f32.xlu2 %v807_v24  ;;  %811 = vmax.xlane.f32.xlu1 %v810_v31  ;;  %v3037_v24 = vpop.f32.mrf.mxu0  ;;  %v3039_v31 = vpop.f32.mrf.mxu1 }
 0x230   : > { %3905 = vst [vmem:[#allocation44_spill] sm:$0xff] %v3037_v24  ;;  %v780_v6 = vmax.f32 %v3029_v20, %v3039_v31 }
 0x231   : > { %3906 = vst [vmem:[#allocation45_spill] sm:$0xff] %v3039_v31 }
 0x237   : > { %766 = vmax.xlane.f32.xlu2 %v765_v10  ;;  %769 = vmax.xlane.f32.xlu1 %v768_v17  ;;  %v777_v10 = vmax.f32 %v3021_v58, %v3031_v28  ;;  %v3045_v17 = vpop.f32.mrf.mxu0 }
 0x238   : > { %3907 = vst [vmem:[#allocation46_spill] sm:$0xff] %v3045_v17 }
 0x23f   : > { %772 = vmax.xlane.f32.xlu2 %v771_v27  ;;  %775 = vmax.xlane.f32.xlu1 %v774_v33  ;;  %v786_v27 = vmax.f32 %v3045_v17, %v2901_v49  ;;  %v783_v33 = vmax.f32 %v3037_v24, %v2895_v46 }
 0x247   : > { %778 = vmax.xlane.f32.xlu2 %v777_v10  ;;  %781 = vmax.xlane.f32.xlu1 %v780_v6 }
 0x24a   : > { %v3047_v25 = vpop.xlane.xlu1 %754 }
 0x24f   : > { %784 = vmax.xlane.f32.xlu2 %v783_v33  ;;  %787 = vmax.xlane.f32.xlu1 %v786_v27 }
 0x252   : > { %v752_v18 = vpop.xlane.xlu1 %751  ;;  %v3053_v5 = vpop.xlane.xlu2 %757 }
 0x253   : > { %v835_v33 = vsub.f32 %v2911_v54, %v752_v18  ;;  %v836_v27 = vsub.f32 %v2913_v55, %v752_v18 }
 0x255   : > { %v888_v15 = vpack.c.bf16 %v836_v27, %v835_v33  ;;  %v839_v33 = vsub.f32 %v2925_v61, %v3053_v5  ;;  %v840_v27 = vsub.f32 %v2927_v62, %v3053_v5 }
 0x257   : > { %v931_v54 = vunpack.c.l.bf16 %v888_v15  ;;  %v932_v55 = vunpack.c.h.bf16 %v888_v15  ;;  %v890_v62 = vpack.c.bf16 %v840_v27, %v839_v33 }
 0x25a   : > { %v746_v26 = vpop.xlane.xlu1 %745  ;;  %v3055_v19 = vpop.xlane.xlu2 %748 }
 0x25b   : > { %v831_v6 = vsub.f32 %v2897_v47, %v746_v26  ;;  %v832_v10 = vsub.f32 %v2899_v48, %v746_v26 }
 0x25d   : > { %v886_v28 = vpack.c.bf16 %v832_v10, %v831_v6 }
 0x25f   : > { %v927_v46 = vunpack.c.l.bf16 %v886_v28  ;;  %v928_v17 = vunpack.c.h.bf16 %v886_v28 }
 0x261   : > { %v1009_v47 = vmul.f32 1.442695, %v927_v46  ;;  %v1011_v26 = vmul.f32 1.442695, %v928_v17  ;;  %v1017_v46 = vmul.f32 1.442695, %v931_v54 }
 0x262   : > { %v740_v58 = vpop.xlane.xlu1 %739  ;;  %v743_v31 = vpop.xlane.xlu2 %742 }
 0x263   : > { %v827_v20 = vsub.f32 %v2887_v42, %v740_v58  ;;  %v828_v49 = vsub.f32 %v2889_v43, %v740_v58  ;;  %v829_v42 = vsub.f32 %v2891_v44, %v743_v31  ;;  %v830_v43 = vsub.f32 %v2893_v45, %v743_v31 }
 0x265   : > { %v884_v24 = vpack.c.bf16 %v828_v49, %v827_v20 }
 0x267   : > { %v923_v32 = vunpack.c.l.bf16 %v884_v24  ;;  %v924_v7 = vunpack.c.h.bf16 %v884_v24 }
 0x269   : > { %v1001_v30 = vmul.f32 1.442695, %v923_v32  ;;  %v1003_v48 = vmul.f32 1.442695, %v924_v7  ;;  %v885_v32 = vpack.c.bf16 %v830_v43, %v829_v42  ;;  %v1019_v7 = vmul.f32 1.442695, %v932_v55 }
 0x26a   : > { %v800_v6 = vpop.xlane.xlu1 %799  ;;  %v3063_v10 = vpop.xlane.xlu2 %802 }
 0x26b   : > { %2184 = vpow2.f32 %v1001_v30  ;;  %v867_v49 = vsub.f32 %v2947_v8, %v800_v6  ;;  %v868_v28 = vsub.f32 %v2949_v9, %v800_v6  ;;  %v925_v45 = vunpack.c.l.bf16 %v885_v32 }
 0x26c   : > { %2186 = vpow2.f32 %v1003_v48  ;;  %v926_v6 = vunpack.c.h.bf16 %v885_v32 }
 0x26d   : > { %2188 = vpow2.f32 %v1009_v47  ;;  %v904_v18 = vpack.c.bf16 %v868_v28, %v867_v49  ;;  %v833_v47 = vsub.f32 %v2903_v50, %v3055_v19  ;;  %v1005_v42 = vmul.f32 1.442695, %v925_v45 }
 0x26e   : > { %2190 = vpow2.f32 %v1011_v26  ;;  %v838_v45 = vsub.f32 %v2917_v57, %v3047_v25 }
 0x26f   : > { %2192 = vpow2.f32 %v1017_v46  ;;  %v963_v8 = vunpack.c.l.bf16 %v904_v18  ;;  %v964_v43 = vunpack.c.h.bf16 %v904_v18 }
 0x270   : > { %2194 = vpow2.f32 %v1019_v7  ;;  %v1007_v7 = vmul.f32 1.442695, %v926_v6 }
 0x271   : > { %v2185_v58 = vpop.eup %2184  ;;  %v1081_v61 = vmul.f32 1.442695, %v963_v8  ;;  %2196 = vpow2.f32 %v1005_v42 }
 0x272   : > { %v2187_v20 = vpop.eup %2186  ;;  %v3069_v30 = vpop.xlane.xlu1 %733 }
 0x273   : > { %v737_v44 = vpop.xlane.xlu2 %736  ;;  %v2189_v24 = vpop.eup %2188  ;;  %v3073_v15 = vpack.c.bf16 %v2187_v20, %v2185_v58  ;;  %v1083_v58 = vmul.f32 1.442695, %v964_v43  ;;  %2198 = vpow2.f32 %v1081_v61 }
 0x274   : > { %v825_v31 = vsub.f32 %v2882_v40, %v737_v44  ;;  %v2191_v17 = vpop.eup %2190  ;;  %v826_v9 = vsub.f32 %v2884_v41, %v737_v44  ;;  %v834_v40 = vsub.f32 %v2905_v51, %v3055_v19 }
 0x275   : > { %v1147_v26 = vunpack.c.l.bf16 %v3073_v15  ;;  %v1148_v41 = vunpack.c.h.bf16 %v3073_v15  ;;  %v3085_v54 = vpack.c.bf16 %v2191_v17, %v2189_v24  ;;  %v2193_v51 = vpop.eup %2192  ;;  %v837_v24 = vsub.f32 %v2915_v56, %v3047_v25 }
 0x276   : > { %v883_v48 = vpack.c.bf16 %v826_v9, %v825_v31  ;;  %v2195_v46 = vpop.eup %2194  ;;  %v887_v18 = vpack.c.bf16 %v834_v40, %v833_v47  ;;  %v935_v31 = vunpack.c.l.bf16 %v890_v62  ;;  %v936_v17 = vunpack.c.h.bf16 %v890_v62 }
 0x277   : > { %v1218_v50 = vadd.f32 %v1148_v41, %v1147_v26  ;;  %v1151_v20 = vunpack.c.l.bf16 %v3085_v54  ;;  %v1152_v44 = vunpack.c.h.bf16 %v3085_v54  ;;  %v3105_v47 = vpack.c.bf16 %v2195_v46, %v2193_v51  ;;  %v2197_v57 = vpop.eup %2196 }
 0x278   : > { %v921_v49 = vunpack.c.l.bf16 %v883_v48  ;;  %v922_v28 = vunpack.c.h.bf16 %v883_v48  ;;  %v929_v8 = vunpack.c.l.bf16 %v887_v18  ;;  %v930_v27 = vunpack.c.h.bf16 %v887_v18 }
 0x279   : > { %1219 = vadd.xlane.f32.xlu1 %v1218_v50  ;;  %v1224_v56 = vadd.f32 %v1152_v44, %v1151_v20  ;;  %v889_v25 = vpack.c.bf16 %v838_v45, %v837_v24  ;;  %v1025_v40 = vmul.f32 1.442695, %v935_v31  ;;  %v2199_v48 = vpop.eup %2198  ;;  %v1027_v6 = vmul.f32 1.442695, %v936_v17 }
 0x27a   : > { %v997_v19 = vmul.f32 1.442695, %v921_v49  ;;  %v999_v5 = vmul.f32 1.442695, %v922_v28  ;;  %v3091_v55 = vpop.xlane.xlu1 %793  ;;  %v1013_v43 = vmul.f32 1.442695, %v929_v8  ;;  %v1155_v50 = vunpack.c.l.bf16 %v3105_v47 }
 0x27b   : > { %v797_v32 = vpop.xlane.xlu2 %796  ;;  %v1015_v28 = vmul.f32 1.442695, %v930_v27  ;;  %v1156_v62 = vunpack.c.h.bf16 %v3105_v47  ;;  %v934_v46 = vunpack.c.h.bf16 %v889_v25  ;;  %v869_v27 = vsub.f32 %v2955_v12, %v3063_v10 }
 0x27c   : > { %2200 = vpow2.f32 %v997_v19  ;;  %v865_v9 = vsub.f32 %v2933_v1, %v797_v32  ;;  %v866_v33 = vsub.f32 %v2935_v2, %v797_v32  ;;  %v933_v19 = vunpack.c.l.bf16 %v889_v25 }
 0x27d   : > { %2202 = vpow2.f32 %v999_v5  ;;  %v1230_v45 = vadd.f32 %v1156_v62, %v1155_v50 }
 0x27e   : > { %2204 = vpow2.f32 %v1083_v58  ;;  %v903_v61 = vpack.c.bf16 %v866_v33, %v865_v9  ;;  %v1021_v17 = vmul.f32 1.442695, %v933_v19  ;;  %v1023_v33 = vmul.f32 1.442695, %v934_v46 }
 0x27f   : > { %2206 = vpow2.f32 %v1007_v7 }
 0x280   : > { %2208 = vpow2.f32 %v1025_v40  ;;  %v961_v18 = vunpack.c.l.bf16 %v903_v61  ;;  %v962_v24 = vunpack.c.h.bf16 %v903_v61 }
 0x281   : > { %1225 = vadd.xlane.f32.xlu1 %v1224_v56  ;;  %2210 = vpow2.f32 %v1027_v6  ;;  %v870_v56 = vsub.f32 %v2957_v13, %v3063_v10  ;;  %v761_v6 = vpop.xlane.xlu0 %760 }
 0x282   : > { %v3107_v42 = vpop.xlane.xlu1 %727  ;;  %v2201_v2 = vpop.eup %2200  ;;  %2212 = vpow2.f32 %v1013_v43  ;;  %v1079_v61 = vmul.f32 1.442695, %v962_v24  ;;  %v842_v19 = vsub.f32 %v2939_v4, %v761_v6 }
 0x283   : > { %v3109_v1 = vpop.xlane.xlu2 %730  ;;  %v2203_v49 = vpop.eup %2202  ;;  %2214 = vpow2.f32 %v1015_v28 }
 0x284   : > { %v2205_v51 = vpop.eup %2204  ;;  %v3113_v5 = vpack.c.bf16 %v2203_v49, %v2201_v2  ;;  %v1077_v2 = vmul.f32 1.442695, %v961_v18  ;;  %2216 = vpow2.f32 %v1021_v17 }
 0x285   : > { %v2207_v32 = vpop.eup %2206  ;;  %v3121_v31 = vpack.c.bf16 %v2205_v51, %v2199_v48  ;;  %2218 = vpow2.f32 %v1023_v33  ;;  %v841_v51 = vsub.f32 %v2937_v3, %v761_v6 }
 0x286   : > { %v1145_v58 = vunpack.c.l.bf16 %v3113_v5  ;;  %v1146_v7 = vunpack.c.h.bf16 %v3113_v5  ;;  %v3127_v9 = vpack.c.bf16 %v2207_v32, %v2197_v57  ;;  %v2209_v48 = vpop.eup %2208  ;;  %v905_v32 = vpack.c.bf16 %v870_v56, %v869_v27 }
 0x287   : > { %v2211_v43 = vpop.eup %2210  ;;  %v3828_v57 = vunpack.c.l.bf16 %v3121_v31  ;;  %v3827_v49 = vunpack.c.h.bf16 %v3121_v31  ;;  %2220 = vpow2.f32 %v1077_v2  ;;  %v891_v3 = vpack.c.bf16 %v842_v19, %v841_v51 }
 0x288   : > { %v1215_v8 = vadd.f32 %v1146_v7, %v1145_v58  ;;  %v2213_v28 = vpop.eup %2212  ;;  %v3826_v12 = vunpack.c.l.bf16 %v3127_v9  ;;  %v3825_v13 = vunpack.c.h.bf16 %v3127_v9  ;;  %2222 = vpow2.f32 %v1079_v61 }
 0x289   : > { %1231 = vadd.xlane.f32.xlu1 %v1230_v45  ;;  %v2215_v10 = vpop.eup %2214  ;;  %v1278_v46 = vadd.f32 %v3827_v49, %v3828_v57  ;;  %v3147_v18 = vpack.c.bf16 %v2211_v43, %v2209_v48  ;;  %v965_v17 = vunpack.c.l.bf16 %v905_v32  ;;  %v966_v27 = vunpack.c.h.bf16 %v905_v32 }
 0x28a   : > { %v3133_v25 = vpop.xlane.xlu1 %721  ;;  %1216 = vadd.xlane.f32.xlu2 %v1215_v8  ;;  %v1221_v24 = vadd.f32 %v3825_v13, %v3826_v12  ;;  %v3153_v45 = vpack.c.bf16 %v2215_v10, %v2213_v28  ;;  %v2217_v33 = vpop.eup %2216  ;;  %v823_v56 = vsub.f32 %v2878_v38, %v3069_v30  ;;  %v824_v48 = vsub.f32 %v2880_v39, %v3069_v30 }
 0x28b   : > { %v3135_v40 = vpop.xlane.xlu2 %790  ;;  %v2219_v2 = vpop.eup %2218  ;;  %v1159_v61 = vunpack.c.l.bf16 %v3147_v18  ;;  %v1160_v28 = vunpack.c.h.bf16 %v3147_v18  ;;  %v937_v38 = vunpack.c.l.bf16 %v891_v3  ;;  %v1087_v39 = vmul.f32 1.442695, %v966_v27 }
 0x28c   : > { %v3850_v51 = vunpack.c.l.bf16 %v3153_v45  ;;  %v3849_v19 = vunpack.c.h.bf16 %v3153_v45  ;;  %v882_v30 = vpack.c.bf16 %v824_v48, %v823_v56  ;;  %v3177_v57 = vpack.c.bf16 %v2219_v2, %v2217_v33 }
 0x28d   : > { %v2221_v10 = vpop.eup %2220  ;;  %v864_v33 = vsub.f32 %v2923_v60, %v3091_v55  ;;  %v821_v2 = vsub.f32 %v2872_v36, %v3109_v1 }
 0x28e   : > { %v2223_v32 = vpop.eup %2222  ;;  %v1227_v12 = vadd.f32 %v3849_v19, %v3850_v51 }
 0x28f   : > { %v3175_v49 = vpack.c.bf16 %v2223_v32, %v2221_v10  ;;  %v863_v10 = vsub.f32 %v2921_v59, %v3091_v55 }
 0x291   : > { %1279 = vadd.xlane.f32.xlu1 %v1278_v46  ;;  %v1085_v46 = vmul.f32 1.442695, %v965_v17  ;;  %v1029_v17 = vmul.f32 1.442695, %v937_v38  ;;  %v822_v38 = vsub.f32 %v2874_v37, %v3109_v1  ;;  %v3835_v1 = vunpack.c.h.bf16 %v3177_v57 }
 0x292   : > { %v806_v8 = vpop.xlane.xlu1 %805  ;;  %1222 = vadd.xlane.f32.xlu2 %v1221_v24 }
 0x293   : > { %v3155_v4 = vpop.xlane.xlu2 %724  ;;  %v871_v6 = vsub.f32 %v2989_v63, %v806_v8  ;;  %v872_v43 = vsub.f32 %v2991_v0, %v806_v8  ;;  %v1236_v0 = vadd.f32 %v1160_v28, %v1159_v61  ;;  %v938_v8 = vunpack.c.h.bf16 %v891_v3 }
 0x294   : > { %2224 = vpow2.f32 %v1085_v46  ;;  %v920_v3 = vunpack.c.h.bf16 %v882_v30  ;;  %v3848_v46 = vunpack.c.l.bf16 %v3175_v49 }
 0x295   : > { %v906_v13 = vpack.c.bf16 %v872_v43, %v871_v6  ;;  %2226 = vpow2.f32 %v1087_v39  ;;  %v919_v6 = vunpack.c.l.bf16 %v882_v30  ;;  %v3836_v30 = vunpack.c.l.bf16 %v3177_v57 }
 0x296   : > { %v995_v55 = vmul.f32 1.442695, %v920_v3 }
 0x297   : > { %v967_v24 = vunpack.c.l.bf16 %v906_v13  ;;  %v968_v63 = vunpack.c.h.bf16 %v906_v13  ;;  %v993_v59 = vmul.f32 1.442695, %v919_v6 }
 0x299   : > { %v1089_v27 = vmul.f32 1.442695, %v967_v24  ;;  %v1091_v56 = vmul.f32 1.442695, %v968_v63  ;;  %1237 = vadd.xlane.f32.xlu1 %v1236_v0  ;;  %v902_v24 = vpack.c.bf16 %v864_v33, %v863_v10  ;;  %v881_v0 = vpack.c.bf16 %v822_v38, %v821_v2 }
 0x29a   : > { %v764_v48 = vpop.xlane.xlu1 %763  ;;  %1228 = vadd.xlane.f32.xlu2 %v1227_v12  ;;  %v3837_v12 = vunpack.c.h.bf16 %v3175_v49  ;;  %v2225_v60 = vpop.eup %2224  ;;  %v1233_v2 = vadd.f32 %v3835_v1, %v3836_v30 }
 0x29b   : > { %v3179_v13 = vpop.xlane.xlu2 %718  ;;  %v843_v43 = vsub.f32 %v2963_v16, %v764_v48  ;;  %v844_v32 = vsub.f32 %v2975_v22, %v764_v48  ;;  %2228 = vpow2.f32 %v1089_v27  ;;  %v1031_v16 = vmul.f32 1.442695, %v938_v8  ;;  %v2227_v22 = vpop.eup %2226 }
 0x29c   : > { %2230 = vpow2.f32 %v1091_v56  ;;  %v1275_v37 = vadd.f32 %v3837_v12, %v3848_v46  ;;  %v917_v33 = vunpack.c.l.bf16 %v881_v0  ;;  %v918_v38 = vunpack.c.h.bf16 %v881_v0 }
 0x29d   : > { %v892_v39 = vpack.c.bf16 %v844_v32, %v843_v43  ;;  %2232 = vpow2.f32 %v1029_v17  ;;  %v959_v17 = vunpack.c.l.bf16 %v902_v24  ;;  %v819_v0 = vsub.f32 %v2868_v34, %v3107_v42 }
 0x29e   : > { %2234 = vpow2.f32 %v1031_v16 }
 0x29f   : > { %v939_v36 = vunpack.c.l.bf16 %v892_v39  ;;  %v940_v63 = vunpack.c.h.bf16 %v892_v39  ;;  %2236 = vpow2.f32 %v993_v59  ;;  %v3207_v39 = vpack.c.bf16 %v2227_v22, %v2225_v60 }
 0x2a0   : > { %2238 = vpow2.f32 %v995_v55  ;;  %v820_v60 = vsub.f32 %v2870_v35, %v3107_v42  ;;  %v989_v22 = vmul.f32 1.442695, %v917_v33 }
 0x2a1   : > { %v1033_v8 = vmul.f32 1.442695, %v939_v36  ;;  %v1035_v27 = vmul.f32 1.442695, %v940_v63  ;;  %v2229_v6 = vpop.eup %2228  ;;  %v3834_v42 = vunpack.c.l.bf16 %v3207_v39  ;;  %v3833_v33 = vunpack.c.h.bf16 %v3207_v39 }
 0x2a2   : > { %v812_v48 = vpop.xlane.xlu1 %811  ;;  %1276 = vadd.xlane.f32.xlu2 %v1275_v37  ;;  %v2231_v43 = vpop.eup %2230  ;;  %v960_v37 = vunpack.c.h.bf16 %v902_v24 }
 0x2a3   : > { %v809_v56 = vpop.xlane.xlu2 %808  ;;  %v875_v3 = vsub.f32 %v3013_v21, %v812_v48  ;;  %v876_v10 = vsub.f32 %v3015_v23, %v812_v48  ;;  %2240 = vpow2.f32 %v1033_v8  ;;  %v3205_v32 = vpack.c.bf16 %v2231_v43, %v2229_v6  ;;  %v2233_v21 = vpop.eup %2232 }
 0x2a4   : > { %2242 = vpow2.f32 %v1035_v27  ;;  %v873_v59 = vsub.f32 %v3001_v11, %v809_v56  ;;  %v874_v55 = vsub.f32 %v3003_v14, %v809_v56  ;;  %v2235_v63 = vpop.eup %2234  ;;  %v1073_v8 = vmul.f32 1.442695, %v959_v17 }
 0x2a5   : > { %v908_v16 = vpack.c.bf16 %v876_v10, %v875_v3  ;;  %v3830_v23 = vunpack.c.l.bf16 %v3205_v32  ;;  %v3829_v36 = vunpack.c.h.bf16 %v3205_v32  ;;  %v2237_v43 = vpop.eup %2236  ;;  %v991_v27 = vmul.f32 1.442695, %v918_v38 }
 0x2a6   : > { %v2239_v14 = vpop.eup %2238  ;;  %v907_v17 = vpack.c.bf16 %v874_v55, %v873_v59  ;;  %2244 = vpow2.f32 %v1073_v8 }
 0x2a7   : > { %v971_v48 = vunpack.c.l.bf16 %v908_v16  ;;  %v972_v6 = vunpack.c.h.bf16 %v908_v16  ;;  %v1284_v11 = vadd.f32 %v3829_v36, %v3830_v23  ;;  %v1075_v16 = vmul.f32 1.442695, %v960_v37 }
 0x2a8   : > { %v880_v36 = vpack.c.bf16 %v820_v60, %v819_v0  ;;  %2246 = vpow2.f32 %v989_v22  ;;  %v861_v23 = vsub.f32 %v2907_v52, %v3135_v40  ;;  %v969_v59 = vunpack.c.l.bf16 %v907_v17 }
 0x2a9   : > { %v2241_v3 = vpop.eup %2240  ;;  %v1097_v10 = vmul.f32 1.442695, %v971_v48  ;;  %1285 = vadd.xlane.f32.xlu1 %v1284_v11  ;;  %v1099_v35 = vmul.f32 1.442695, %v972_v6  ;;  %2248 = vpow2.f32 %v991_v27  ;;  %v970_v48 = vunpack.c.h.bf16 %v907_v17  ;;  %v3908_v11 = vld [vmem:[#allocation28_spill] sm:$0xff] }
 0x2aa   : > { %v3223_v24 = vpop.xlane.xlu1 %769  ;;  %1234 = vadd.xlane.f32.xlu2 %v1233_v2  ;;  %v2243_v34 = vpop.eup %2242  ;;  %v862_v2 = vsub.f32 %v2909_v53, %v3135_v40  ;;  %v1281_v37 = vadd.f32 %v3833_v33, %v3834_v42  ;;  %v3239_v6 = vpack.c.bf16 %v2235_v63, %v2233_v21  ;;  %v915_v52 = vunpack.c.l.bf16 %v880_v36 }
 0x2ab   : > { %v3221_v56 = vpop.xlane.xlu2 %766  ;;  %v3227_v38 = vpack.c.bf16 %v2243_v34, %v2241_v3  ;;  %2250 = vpow2.f32 %v1097_v10  ;;  %v3245_v40 = vpack.c.bf16 %v2239_v14, %v2237_v43  ;;  %v916_v60 = vunpack.c.h.bf16 %v880_v36  ;;  %v3909_v34 = vld [vmem:[#allocation38_spill] sm:$0xff] }
 0x2ac   : > { %2252 = vpow2.f32 %v1099_v35  ;;  %v2245_v0 = vpop.eup %2244  ;;  %v815_v22 = vsub.f32 %v2856_v29, %v3133_v25  ;;  %v816_v27 = vsub.f32 %v3908_v11, %v3133_v25  ;;  %v901_v3 = vpack.c.bf16 %v862_v2, %v861_v23 }
 0x2ad   : > { %v3832_v55 = vunpack.c.l.bf16 %v3227_v38  ;;  %v3831_v8 = vunpack.c.h.bf16 %v3227_v38  ;;  %2254 = vpow2.f32 %v1075_v16  ;;  %v1093_v10 = vmul.f32 1.442695, %v969_v59  ;;  %v3910_v16 = vld [vmem:[#allocation41_spill] sm:$0xff] }
 0x2ae   : > { %v2247_v17 = vpop.eup %2246  ;;  %v1095_v14 = vmul.f32 1.442695, %v970_v48  ;;  %v3847_v25 = vunpack.c.l.bf16 %v3245_v40  ;;  %v3846_v23 = vunpack.c.h.bf16 %v3245_v40  ;;  %v3838_v2 = vunpack.c.h.bf16 %v3239_v6  ;;  %v3911_v48 = vld [vmem:[#allocation29_spill] sm:$0xff] }
 0x2af   : > { %v1242_v53 = vadd.f32 %v3831_v8, %v3832_v55  ;;  %v2249_v43 = vpop.eup %2248  ;;  %v3839_v8 = vunpack.c.l.bf16 %v3239_v6  ;;  %v985_v55 = vmul.f32 1.442695, %v915_v52  ;;  %v987_v59 = vmul.f32 1.442695, %v916_v60 }
 0x2b0   : > { %v958_v42 = vunpack.c.h.bf16 %v901_v3  ;;  %2256 = vpow2.f32 %v1093_v10  ;;  %v3263_v12 = vpack.c.bf16 %v2249_v43, %v2247_v17  ;;  %v1212_v60 = vadd.f32 %v3846_v23, %v3847_v25  ;;  %v3920_v23 = vld [vmem:[#allocation31_spill] sm:$0xff] }
 0x2b1   : > { %1243 = vadd.xlane.f32.xlu1 %v1242_v53  ;;  %v2251_v29 = vpop.eup %2250  ;;  %v957_v53 = vunpack.c.l.bf16 %v901_v3  ;;  %2258 = vpow2.f32 %v1095_v14 }
 0x2b2   : > { %v776_v63 = vpop.xlane.xlu1 %775  ;;  %1282 = vadd.xlane.f32.xlu2 %v1281_v37  ;;  %v2253_v11 = vpop.eup %2252  ;;  %v878_v37 = vpack.c.bf16 %v816_v27, %v815_v22  ;;  %2260 = vpow2.f32 %v985_v55  ;;  %v1239_v22 = vadd.f32 %v3838_v2, %v3839_v8 }
 0x2b3   : > { %v3251_v21 = vpop.xlane.xlu2 %772  ;;  %v851_v35 = vsub.f32 %v3909_v34, %v776_v63  ;;  %v852_v36 = vsub.f32 %v3910_v16, %v776_v63  ;;  %v2255_v34 = vpop.eup %2254  ;;  %v817_v63 = vsub.f32 %v3911_v48, %v3155_v4  ;;  %v3912_v16 = vld [vmem:[#allocation30_spill] sm:$0xff]  ;;  %v3273_v27 = vpack.c.bf16 %v2253_v11, %v2251_v29 }
 0x2b4   : > { %v818_v1 = vsub.f32 %v3912_v16, %v3155_v4  ;;  %2262 = vpow2.f32 %v987_v59  ;;  %v911_v55 = vunpack.c.l.bf16 %v878_v37  ;;  %v912_v17 = vunpack.c.h.bf16 %v878_v37  ;;  %v3913_v48 = vld [vmem:[#allocation26_spill] sm:$0xff] }
 0x2b5   : > { %v896_v33 = vpack.c.bf16 %v852_v36, %v851_v35  ;;  %v1069_v35 = vmul.f32 1.442695, %v957_v53  ;;  %v1071_v36 = vmul.f32 1.442695, %v958_v42  ;;  %v813_v29 = vsub.f32 %v3913_v48, %v3179_v13 }
 0x2b6   : > { %v879_v43 = vpack.c.bf16 %v818_v1, %v817_v63  ;;  %v3842_v11 = vunpack.c.l.bf16 %v3263_v12  ;;  %v2257_v59 = vpop.eup %2256  ;;  %v3843_v37 = vunpack.c.l.bf16 %v3273_v27  ;;  %v3840_v1 = vunpack.c.h.bf16 %v3273_v27 }
 0x2b7   : > { %v947_v52 = vunpack.c.l.bf16 %v896_v33  ;;  %v948_v30 = vunpack.c.h.bf16 %v896_v33  ;;  %v3277_v33 = vpack.c.bf16 %v2255_v34, %v2245_v0  ;;  %v3914_v0 = vld [vmem:[#allocation27_spill] sm:$0xff]  ;;  %v2259_v53 = vpop.eup %2258  ;;  %v977_v42 = vmul.f32 1.442695, %v911_v55 }
 0x2b8   : > { %v814_v34 = vsub.f32 %v3914_v0, %v3179_v13  ;;  %v2261_v63 = vpop.eup %2260  ;;  %v913_v16 = vunpack.c.l.bf16 %v879_v43  ;;  %v914_v48 = vunpack.c.h.bf16 %v879_v43  ;;  %v3299_v55 = vpack.c.bf16 %v2259_v53, %v2257_v59  ;;  %v3915_v43 = vld [vmem:[#allocation46_spill] sm:$0xff] }
 0x2b9   : > { %v1049_v4 = vmul.f32 1.442695, %v947_v52  ;;  %v1051_v3 = vmul.f32 1.442695, %v948_v30  ;;  %1213 = vadd.xlane.f32.xlu1 %v1212_v60  ;;  %v3841_v30 = vunpack.c.h.bf16 %v3263_v12  ;;  %v3845_v52 = vunpack.c.l.bf16 %v3277_v33 }
 0x2ba   : > { %v3275_v10 = vpop.xlane.xlu1 %781  ;;  %1240 = vadd.xlane.f32.xlu2 %v1239_v22  ;;  %v2263_v60 = vpop.eup %2262  ;;  %v979_v22 = vmul.f32 1.442695, %v912_v17  ;;  %v3844_v2 = vunpack.c.h.bf16 %v3277_v33  ;;  %v877_v13 = vpack.c.bf16 %v814_v34, %v813_v29  ;;  %v981_v17 = vmul.f32 1.442695, %v913_v16  ;;  %v3916_v34 = vld [vmem:[#allocation32_spill] sm:$0xff] }
 0x2bb   : > { %v3279_v14 = vpop.xlane.xlu2 %778  ;;  %2264 = vpow2.f32 %v1049_v4  ;;  %v1290_v4 = vadd.f32 %v3840_v1, %v3843_v37  ;;  %v983_v59 = vmul.f32 1.442695, %v914_v48 }
 0x2bc   : > { %2266 = vpow2.f32 %v1051_v3  ;;  %v1209_v3 = vadd.f32 %v3841_v30, %v3842_v11  ;;  %v1272_v1 = vadd.f32 %v3844_v2, %v3845_v52  ;;  %v909_v53 = vunpack.c.l.bf16 %v877_v13 }
 0x2bd   : > { %2268 = vpow2.f32 %v1069_v35  ;;  %v3317_v52 = vpack.c.bf16 %v2263_v60, %v2261_v63  ;;  %v910_v51 = vunpack.c.h.bf16 %v877_v13 }
 0x2be   : > { %2270 = vpow2.f32 %v1071_v36 }
 0x2bf   : > { %2272 = vpow2.f32 %v977_v42  ;;  %v1193_v42 = vunpack.c.l.bf16 %v3299_v55 }
 0x2c0   : > { %2274 = vpow2.f32 %v979_v22  ;;  %v3918_v22 = vld [vmem:[#allocation45_spill] sm:$0xff] }
 0x2c1   : > { %v2265_v0 = vpop.eup %2264  ;;  %1291 = vadd.xlane.f32.xlu1 %v1290_v4  ;;  %v3917_v4 = vld [vmem:[#allocation42_spill] sm:$0xff]  ;;  %2276 = vpow2.f32 %v981_v17 }
 0x2c2   : > { %v788_v35 = vpop.xlane.xlu1 %787  ;;  %1210 = vadd.xlane.f32.xlu2 %v1209_v3  ;;  %v2267_v29 = vpop.eup %2266  ;;  %v855_v3 = vsub.f32 %v3917_v4, %v3275_v10  ;;  %2278 = vpow2.f32 %v983_v59  ;;  %v1139_v59 = vunpack.c.l.bf16 %v3317_v52 }
 0x2c3   : > { %v859_v36 = vsub.f32 %v3915_v43, %v788_v35  ;;  %v860_v8 = vsub.f32 %v3916_v34, %v788_v35  ;;  %v2269_v30 = vpop.eup %2268  ;;  %v785_v11 = vpop.xlane.xlu2 %784  ;;  %v3307_v37 = vpack.c.bf16 %v2267_v29, %v2265_v0  ;;  %v856_v35 = vsub.f32 %v3918_v22, %v3275_v10  ;;  %v3919_v0 = vld [vmem:[#allocation44_spill] sm:$0xff] }
 0x2c4   : > { %v2271_v16 = vpop.eup %2270  ;;  %v1194_v34 = vunpack.c.h.bf16 %v3299_v55  ;;  %v857_v29 = vsub.f32 %v3919_v0, %v785_v11  ;;  %v858_v25 = vsub.f32 %v3920_v23, %v785_v11 }
 0x2c5   : > { %v900_v43 = vpack.c.bf16 %v860_v8, %v859_v36  ;;  %v3852_v2 = vunpack.c.l.bf16 %v3307_v37  ;;  %v3851_v48 = vunpack.c.h.bf16 %v3307_v37  ;;  %v2273_v4 = vpop.eup %2272  ;;  %v3325_v10 = vpack.c.bf16 %v2271_v16, %v2269_v30 }
 0x2c6   : > { %v2275_v17 = vpop.eup %2274  ;;  %v973_v36 = vmul.f32 1.442695, %v909_v53  ;;  %v898_v63 = vpack.c.bf16 %v856_v35, %v855_v3  ;;  %v1287_v23 = vadd.f32 %v1194_v34, %v1193_v42  ;;  %v899_v60 = vpack.c.bf16 %v858_v25, %v857_v29  ;;  %v3921_v3 = vld [vmem:[#allocation33_spill] sm:$0xff]  ;;  %v3923_v29 = vld [vmem:[#allocation40_spill] sm:$0xff] }
 0x2c7   : > { %v955_v46 = vunpack.c.l.bf16 %v900_v43  ;;  %v956_v19 = vunpack.c.h.bf16 %v900_v43  ;;  %v1254_v8 = vadd.f32 %v3851_v48, %v3852_v2  ;;  %v2277_v22 = vpop.eup %2276  ;;  %v975_v43 = vmul.f32 1.442695, %v910_v51 }
 0x2c8   : > { %v1140_v30 = vunpack.c.h.bf16 %v3317_v52  ;;  %v3854_v53 = vunpack.c.l.bf16 %v3325_v10  ;;  %v3853_v16 = vunpack.c.h.bf16 %v3325_v10  ;;  %2280 = vpow2.f32 %v973_v36 }
 0x2c9   : > { %v1065_v11 = vmul.f32 1.442695, %v955_v46  ;;  %1273 = vadd.xlane.f32.xlu1 %v1272_v1  ;;  %1255 = vadd.xlane.f32.xlu0 %v1254_v8  ;;  %v1067_v13 = vmul.f32 1.442695, %v956_v19  ;;  %v845_v35 = vsub.f32 %v3921_v3, %v3221_v56  ;;  %v3922_v46 = vld [vmem:[#allocation35_spill] sm:$0xff]  ;;  %v951_v25 = vunpack.c.l.bf16 %v898_v63  ;;  %v2279_v19 = vpop.eup %2278 }
 0x2ca   : > { %1288 = vadd.xlane.f32.xlu2 %v1287_v23  ;;  %v846_v1 = vsub.f32 %v3922_v46, %v3221_v56  ;;  %v952_v0 = vunpack.c.h.bf16 %v898_v63  ;;  %v853_v51 = vsub.f32 %v3923_v29, %v3279_v14  ;;  %v3924_v8 = vld [vmem:[#allocation43_spill] sm:$0xff]  ;;  %v953_v48 = vunpack.c.l.bf16 %v899_v60 }
 0x2cb   : > { %2282 = vpow2.f32 %v1065_v11  ;;  %v854_v23 = vsub.f32 %v3924_v8, %v3279_v14  ;;  %v954_v36 = vunpack.c.h.bf16 %v899_v60  ;;  %v1206_v3 = vadd.f32 %v1140_v30, %v1139_v59 }
 0x2cc   : > { %2284 = vpow2.f32 %v1067_v13  ;;  %v3347_v56 = vpack.c.bf16 %v2275_v17, %v2273_v4  ;;  %v893_v46 = vpack.c.bf16 %v846_v1, %v845_v35  ;;  %v1057_v63 = vmul.f32 1.442695, %v951_v25 }
 0x2cd   : > { %2286 = vpow2.f32 %v975_v43  ;;  %v1269_v11 = vadd.f32 %v3853_v16, %v3854_v53  ;;  %v3353_v29 = vpack.c.bf16 %v2279_v19, %v2277_v22  ;;  %v1059_v14 = vmul.f32 1.442695, %v952_v0 }
 0x2ce   : > { %v2281_v13 = vpop.eup %2280  ;;  %v897_v60 = vpack.c.bf16 %v854_v23, %v853_v51  ;;  %v1061_v43 = vmul.f32 1.442695, %v953_v48  ;;  %v1063_v2 = vmul.f32 1.442695, %v954_v36  ;;  %v1135_v4 = vunpack.c.l.bf16 %v3347_v56  ;;  %v3925_v51 = vld [vmem:[#allocation36_spill] sm:$0xff]  ;;  %v3926_v23 = vld [vmem:[#allocation39_spill] sm:$0xff] }
 0x2cf   : > { %v3855_v17 = vunpack.c.h.bf16 %v3347_v56  ;;  %v941_v1 = vunpack.c.l.bf16 %v893_v46  ;;  %2288 = vpow2.f32 %v1057_v63  ;;  %v3859_v25 = vunpack.c.l.bf16 %v3353_v29 }
 0x2d0   : > { %v3856_v22 = vunpack.c.h.bf16 %v3353_v29  ;;  %v942_v0 = vunpack.c.h.bf16 %v893_v46  ;;  %2290 = vpow2.f32 %v1059_v14  ;;  %v849_v48 = vsub.f32 %v3925_v51, %v3251_v21 }
 0x2d1   : > { %1207 = vadd.xlane.f32.xlu1 %v1206_v3  ;;  %v2283_v8 = vpop.eup %2282  ;;  %v850_v36 = vsub.f32 %v3926_v23, %v3251_v21  ;;  %v949_v3 = vunpack.c.l.bf16 %v897_v60  ;;  %2292 = vpow2.f32 %v1061_v43  ;;  %v1200_v63 = vadd.f32 %v3855_v17, %v1135_v4 }
 0x2d2   : > { %1270 = vadd.xlane.f32.xlu2 %v1269_v11  ;;  %v2285_v35 = vpop.eup %2284  ;;  %v950_v11 = vunpack.c.h.bf16 %v897_v60  ;;  %2294 = vpow2.f32 %v1063_v2  ;;  %v1037_v53 = vmul.f32 1.442695, %v941_v1  ;;  %v1203_v46 = vadd.f32 %v3856_v22, %v3859_v25 }
 0x2d3   : > { %v2287_v19 = vpop.eup %2286  ;;  %v3367_v16 = vpack.c.bf16 %v2285_v35, %v2283_v8  ;;  %v1039_v21 = vmul.f32 1.442695, %v942_v0  ;;  %v895_v60 = vpack.c.bf16 %v850_v36, %v849_v48  ;;  %v1053_v2 = vmul.f32 1.442695, %v949_v3  ;;  %v3928_v48 = vld [vmem:[#allocation37_spill] sm:$0xff] }
 0x2d4   : > { %v3373_v14 = vpack.c.bf16 %v2287_v19, %v2281_v13  ;;  %v1055_v23 = vmul.f32 1.442695, %v950_v11  ;;  %2296 = vpow2.f32 %v1037_v53  ;;  %v3927_v19 = vld [vmem:[#allocation34_spill] sm:$0xff]  ;;  %v848_v36 = vsub.f32 %v3928_v48, %v3223_v24 }
 0x2d5   : > { %v2289_v43 = vpop.eup %2288  ;;  %v3858_v17 = vunpack.c.l.bf16 %v3367_v16  ;;  %v3857_v8 = vunpack.c.h.bf16 %v3367_v16  ;;  %2298 = vpow2.f32 %v1039_v21  ;;  %v847_v0 = vsub.f32 %v3927_v19, %v3223_v24 }
 0x2d6   : > { %v2291_v51 = vpop.eup %2290  ;;  %v1133_v1 = vunpack.c.l.bf16 %v3373_v14  ;;  %v3860_v22 = vunpack.c.h.bf16 %v3373_v14  ;;  %v945_v3 = vunpack.c.l.bf16 %v895_v60  ;;  %2300 = vpow2.f32 %v1053_v2 }
 0x2d7   : > { %v2293_v35 = vpop.eup %2292  ;;  %v946_v11 = vunpack.c.h.bf16 %v895_v60  ;;  %2302 = vpow2.f32 %v1055_v23  ;;  %v1266_v53 = vadd.f32 %v3857_v8, %v3858_v17  ;;  %v894_v19 = vpack.c.bf16 %v848_v36, %v847_v0 }
 0x2d8   : > { %v2295_v13 = vpop.eup %2294  ;;  %v1045_v2 = vmul.f32 1.442695, %v945_v3 }
 0x2d9   : > { %1201 = vadd.xlane.f32.xlu1 %v1200_v63  ;;  %v3387_v63 = vpack.c.bf16 %v2291_v51, %v2289_v43  ;;  %v3393_v21 = vpack.c.bf16 %v2295_v13, %v2293_v35  ;;  %v1047_v23 = vmul.f32 1.442695, %v946_v11  ;;  %v944_v35 = vunpack.c.h.bf16 %v894_v19 }
 0x2da   : > { %1204 = vadd.xlane.f32.xlu2 %v1203_v46  ;;  %v1197_v46 = vadd.f32 %v3860_v22, %v1133_v1  ;;  %v2297_v24 = vpop.eup %2296  ;;  %v943_v22 = vunpack.c.l.bf16 %v894_v19  ;;  %2304 = vpow2.f32 %v1045_v2 }
 0x2db   : > { %v2299_v60 = vpop.eup %2298  ;;  %v1175_v48 = vunpack.c.l.bf16 %v3387_v63  ;;  %v3861_v8 = vunpack.c.h.bf16 %v3387_v63  ;;  %v1177_v51 = vunpack.c.l.bf16 %v3393_v21  ;;  %v3862_v17 = vunpack.c.h.bf16 %v3393_v21 }
 0x2dc   : > { %v2301_v43 = vpop.eup %2300  ;;  %2306 = vpow2.f32 %v1047_v23  ;;  %v3403_v0 = vpack.c.bf16 %v2299_v60, %v2297_v24  ;;  %v1041_v11 = vmul.f32 1.442695, %v943_v22 }
 0x2dd   : > { %v2303_v25 = vpop.eup %2302  ;;  %v1260_v13 = vadd.f32 %v3861_v8, %v1175_v48  ;;  %v1263_v36 = vadd.f32 %v3862_v17, %v1177_v51 }
 0x2de   : > { %v3409_v3 = vpack.c.bf16 %v2303_v25, %v2301_v43  ;;  %v3864_v19 = vunpack.c.l.bf16 %v3403_v0  ;;  %v3863_v2 = vunpack.c.h.bf16 %v3403_v0 }
 0x2e0   : > { %v2305_v23 = vpop.eup %2304  ;;  %v1173_v24 = vunpack.c.l.bf16 %v3409_v3  ;;  %v1174_v60 = vunpack.c.h.bf16 %v3409_v3  ;;  %v1245_v25 = vadd.f32 %v3863_v2, %v3864_v19 }
 0x2e1   : > { %1267 = vadd.xlane.f32.xlu1 %v1266_v53  ;;  %v1043_v53 = vmul.f32 1.442695, %v944_v35 }
 0x2e2   : > { %1198 = vadd.xlane.f32.xlu2 %v1197_v46  ;;  %v2307_v8 = vpop.eup %2306  ;;  %v1257_v22 = vadd.f32 %v1174_v60, %v1173_v24 }
 0x2e3   : > { %v3423_v43 = vpack.c.bf16 %v2307_v8, %v2305_v23 }
 0x2e9   : > { %1261 = vadd.xlane.f32.xlu1 %v1260_v13 }
 0x2ea   : > { %1264 = vadd.xlane.f32.xlu2 %v1263_v36 }
 0x2ec   : > { %v1220_v46 = vpop.xlane.xlu1 %1219 }
 0x2ed   : > { %2308 = vrcp.f32 %v1220_v46 }
 0x2ee   : > { %2310 = vpow2.f32 %v1041_v11  ;;  %v1169_v11 = vunpack.c.l.bf16 %v3423_v43 }
 0x2ef   : > { %2312 = vpow2.f32 %v1043_v53  ;;  %v3865_v53 = vunpack.c.h.bf16 %v3423_v43 }
 0x2f1   : > { %1246 = vadd.xlane.f32.xlu1 %v1245_v25  ;;  %v1251_v23 = vadd.f32 %v3865_v53, %v1169_v11 }
 0x2f2   : > { %1258 = vadd.xlane.f32.xlu2 %v1257_v22 }
 0x2f3   : > { %v2309_v35 = vpop.eup %2308 }
 0x2f4   : > { %v1332_v13 = vpack.c.bf16 %v2309_v35, %v2309_v35  ;;  %v1226_v36 = vpop.xlane.xlu1 %1225  ;;  %v2311_v46 = vpop.eup %2310 }
 0x2f5   : > { %2314 = vrcp.f32 %v1226_v36  ;;  %v2313_v17 = vpop.eup %2312 }
 0x2f6   : > { %v1364_v2 = vunpack.c.l.bf16 %v1332_v13  ;;  %v3436_v25 = vpack.c.bf16 %v2313_v17, %v2311_v46 }
 0x2f8   : > { %v1403_v19 = vmul.f32 %v1364_v2, %v1147_v26  ;;  %v1404_v8 = vmul.f32 %v1364_v2, %v1148_v41  ;;  %v1167_v15 = vunpack.c.l.bf16 %v3436_v25  ;;  %v3866_v41 = vunpack.c.h.bf16 %v3436_v25 }
 0x2fa   : > { %v1460_v22 = vpack.c.bf16 %v1404_v8, %v1403_v19  ;;  %1252 = vadd.xlane.f32.xlu2 %v1251_v23  ;;  %v1248_v46 = vadd.f32 %v3866_v41, %v1167_v15 }
 0x2fb   : > { %v2315_v35 = vpop.eup %2314 }
 0x2fc   : > { %1492 = vst [vmem:[%s3438_s10 + $0x38] sm:$0xff] %v1460_v22  ;;  %v1334_v13 = vpack.c.bf16 %v2315_v35, %v2315_v35  ;;  %v1232_v26 = vpop.xlane.xlu1 %1231 }
 0x2fd   : > { %v1217_v36 = vpop.xlane.xlu2 %1216  ;;  %2316 = vrcp.f32 %v1232_v26 }
 0x2fe   : > { %v1366_v2 = vunpack.c.l.bf16 %v1334_v13  ;;  %2318 = vrcp.f32 %v1217_v36 }
 0x300   : > { %v1407_v17 = vmul.f32 %v1366_v2, %v1151_v20  ;;  %v1408_v19 = vmul.f32 %v1366_v2, %v1152_v44 }
 0x302   : > { %v1462_v8 = vpack.c.bf16 %v1408_v19, %v1407_v17  ;;  %1249 = vadd.xlane.f32.xlu2 %v1248_v46 }
 0x303   : > { %v2317_v23 = vpop.eup %2316 }
 0x304   : > { %v2319_v35 = vpop.eup %2318  ;;  %1494 = vst [vmem:[%s3438_s10 + $0x48] sm:$0xff] %v1462_v8  ;;  %v1336_v26 = vpack.c.bf16 %v2317_v23, %v2317_v23  ;;  %v1280_v13 = vpop.xlane.xlu1 %1279 }
 0x305   : > { %v1331_v36 = vpack.c.bf16 %v2319_v35, %v2319_v35  ;;  %v1223_v53 = vpop.xlane.xlu2 %1222  ;;  %2320 = vrcp.f32 %v1280_v13 }
 0x306   : > { %v1368_v20 = vunpack.c.l.bf16 %v1336_v26  ;;  %2322 = vrcp.f32 %v1223_v53 }
 0x307   : > { %v1363_v54 = vunpack.c.l.bf16 %v1331_v36  ;;  %v1573_v36 = vunpack.c.l.b16 %v1460_v22 }
 0x308   : > { %v1411_v44 = vmul.f32 %v1368_v20, %v1155_v50  ;;  %v1412_v2 = vmul.f32 %v1368_v20, %v1156_v62  ;;  %v1574_v50 = vunpack.c.h.b16 %v1460_v22  ;;  %v3930_v22 = vunpack.c.h.bf16 %v3121_v31 }
 0x309   : > { %v1401_v17 = vmul.f32 %v1363_v54, %v1145_v58  ;;  %v1402_v19 = vmul.f32 %v1363_v54, %v1146_v7 }
 0x30a   : > { %v3460_v46 = vpack.c.bf16 %v1412_v2, %v1411_v44  ;;  %v3929_v2 = vunpack.c.l.bf16 %v3121_v31 }
 0x30b   : > { %v2321_v23 = vpop.eup %2320  ;;  %v1459_v35 = vpack.c.bf16 %v1402_v19, %v1401_v17 }
 0x30c   : > { %v2323_v26 = vpop.eup %2322  ;;  %1496 = vst [vmem:[%s3438_s10 + $0x58] sm:$0xff] %v3460_v46  ;;  %v1352_v53 = vpack.c.bf16 %v2321_v23, %v2321_v23  ;;  %v1238_v13 = vpop.xlane.xlu1 %1237  ;;  %v3931_v23 = vunpack.c.l.bf16 %v3127_v9 }
 0x30d   : > { %1491 = vst [vmem:[%s3438_s10 + $0x30] sm:$0xff] %v1459_v35  ;;  %v1333_v47 = vpack.c.bf16 %v2323_v26, %v2323_v26  ;;  %v1229_v62 = vpop.xlane.xlu2 %1228  ;;  %2324 = vrcp.f32 %v1238_v13  ;;  %v1571_v58 = vunpack.c.l.b16 %v1459_v35  ;;  %v1572_v20 = vunpack.c.h.b16 %v1459_v35 }
 0x30e   : > { %v1384_v5 = vunpack.c.l.bf16 %v1352_v53  ;;  %2326 = vrcp.f32 %v1229_v62  ;;  %v3932_v13 = vunpack.c.h.bf16 %v3127_v9 }
 0x30f   : > { %v1365_v7 = vunpack.c.l.bf16 %v1333_v47  ;;  %v3465_v54 = vpack.c.b16 %v1573_v36, %v1571_v58  ;;  %v3467_v44 = vpack.c.b16 %v1574_v50, %v1572_v20  ;;  %v1577_v50 = vunpack.c.l.b16 %v1462_v8 }
 0x310   : > { %v1443_v17 = vmul.f32 %v1384_v5, %v3929_v2  ;;  %v1444_v19 = vmul.f32 %v1384_v5, %v3930_v22  ;;  %v1578_v5 = vunpack.c.h.b16 %v1462_v8 }
 0x311   : > { %v1405_v26 = vmul.f32 %v1365_v7, %v3931_v23  ;;  %v1406_v35 = vmul.f32 %v1365_v7, %v3932_v13  ;;  %v3934_v13 = vunpack.c.h.bf16 %v3153_v45 }
 0x312   : > { %v1480_v53 = vpack.c.bf16 %v1444_v19, %v1443_v17  ;;  %v3933_v19 = vunpack.c.l.bf16 %v3153_v45 }
 0x313   : > { %v2325_v41 = vpop.eup %2324  ;;  %v1461_v62 = vpack.c.bf16 %v1406_v35, %v1405_v26 }
 0x314   : > { %v2327_v47 = vpop.eup %2326  ;;  %1512 = vst [vmem:[%s3438_s10 + $0xd8] sm:$0xff] %v1480_v53  ;;  %v1338_v36 = vpack.c.bf16 %v2325_v41, %v2325_v41 }
 0x315   : > { %1493 = vst [vmem:[%s3438_s10 + $0x40] sm:$0xff] %v1461_v62  ;;  %v1335_v58 = vpack.c.bf16 %v2327_v47, %v2327_v47  ;;  %v1277_v20 = vpop.xlane.xlu2 %1276  ;;  %v1575_v2 = vunpack.c.l.b16 %v1461_v62  ;;  %v1576_v31 = vunpack.c.h.b16 %v1461_v62 }
 0x316   : > { %v1370_v22 = vunpack.c.l.bf16 %v1338_v36  ;;  %2328 = vrcp.f32 %v1277_v20 }
 0x317   : > { %v1367_v23 = vunpack.c.l.bf16 %v1335_v58  ;;  %v3479_v9 = vpack.c.b16 %v1577_v50, %v1575_v2  ;;  %v3481_v7 = vpack.c.b16 %v1578_v5, %v1576_v31  ;;  %v3935_v50 = vunpack.c.l.bf16 %v3175_v49 }
 0x318   : > { %v1415_v17 = vmul.f32 %v1370_v22, %v1159_v61  ;;  %v1416_v41 = vmul.f32 %v1370_v22, %v1160_v28  ;;  %v3936_v58 = vunpack.c.h.bf16 %v3175_v49  ;;  %v1613_v5 = vunpack.c.l.b16 %v1480_v53 }
 0x319   : > { %v1409_v26 = vmul.f32 %v1367_v23, %v3933_v19  ;;  %v1410_v35 = vmul.f32 %v1367_v23, %v3934_v13  ;;  %v1614_v13 = vunpack.c.h.b16 %v1480_v53 }
 0x31a   : > { %v3491_v8 = vpack.c.bf16 %v1416_v41, %v1415_v17 }
 0x31b   : > { %v3493_v62 = vpack.c.bf16 %v1410_v35, %v1409_v26 }
 0x31c   : > { %v2329_v47 = vpop.eup %2328  ;;  %1498 = vst [vmem:[%s3438_s10 + $0x68] sm:$0xff] %v3491_v8  ;;  %v1286_v18 = vpop.xlane.xlu1 %1285 }
 0x31d   : > { %1495 = vst [vmem:[%s3438_s10 + $0x50] sm:$0xff] %v3493_v62  ;;  %v1351_v61 = vpack.c.bf16 %v2329_v47, %v2329_v47  ;;  %v1235_v36 = vpop.xlane.xlu2 %1234  ;;  %v1580_v55 = vunpack.c.h.b16 %v3493_v62 }
 0x31e   : > { %2330 = vrcp.f32 %v1235_v36 }
 0x31f   : > { %v1383_v28 = vunpack.c.l.bf16 %v1351_v61  ;;  %2332 = vrcp.f32 %v1286_v18  ;;  %v3937_v18 = vunpack.c.l.bf16 %v3177_v57 }
 0x321   : > { %v1441_v45 = vmul.f32 %v1383_v28, %v3935_v50  ;;  %v1442_v20 = vmul.f32 %v1383_v28, %v3936_v58  ;;  %v3938_v50 = vunpack.c.h.bf16 %v3177_v57  ;;  %v3939_v58 = vunpack.c.l.bf16 %v3205_v32 }
 0x323   : > { %v1479_v2 = vpack.c.bf16 %v1442_v20, %v1441_v45  ;;  %v3940_v20 = vunpack.c.h.bf16 %v3205_v32  ;;  %v3941_v32 = vunpack.c.l.bf16 %v3207_v39 }
 0x324   : > { %v2331_v31 = vpop.eup %2330  ;;  %v1244_v41 = vpop.xlane.xlu1 %1243 }
 0x325   : > { %v2333_v22 = vpop.eup %2332  ;;  %1511 = vst [vmem:[%s3438_s10 + $0xd0] sm:$0xff] %v1479_v2  ;;  %v1337_v23 = vpack.c.bf16 %v2331_v31, %v2331_v31  ;;  %v1283_v17 = vpop.xlane.xlu2 %1282  ;;  %v1611_v19 = vunpack.c.l.b16 %v1479_v2  ;;  %v1612_v26 = vunpack.c.h.b16 %v1479_v2 }
 0x326   : > { %v1354_v35 = vpack.c.bf16 %v2333_v22, %v2333_v22  ;;  %2334 = vrcp.f32 %v1283_v17 }
 0x327   : > { %v1369_v47 = vunpack.c.l.bf16 %v1337_v23  ;;  %2336 = vrcp.f32 %v1244_v41  ;;  %v3504_v61 = vpack.c.b16 %v1613_v5, %v1611_v19  ;;  %v3506_v49 = vpack.c.b16 %v1614_v13, %v1612_v26 }
 0x328   : > { %v1386_v36 = vunpack.c.l.bf16 %v1354_v35 }
 0x329   : > { %v1413_v28 = vmul.f32 %v1369_v47, %v3937_v18  ;;  %v1414_v45 = vmul.f32 %v1369_v47, %v3938_v50  ;;  %v3942_v47 = vunpack.c.h.bf16 %v3207_v39  ;;  %v3943_v18 = vunpack.c.l.bf16 %v3227_v38 }
 0x32a   : > { %v1447_v53 = vmul.f32 %v1386_v36, %v3939_v58  ;;  %v1448_v2 = vmul.f32 %v1386_v36, %v3940_v20  ;;  %v3944_v50 = vunpack.c.h.bf16 %v3227_v38 }
 0x32b   : > { %v3516_v31 = vpack.c.bf16 %v1414_v45, %v1413_v28 }
 0x32c   : > { %v2335_v22 = vpop.eup %2334  ;;  %v1482_v5 = vpack.c.bf16 %v1448_v2, %v1447_v53  ;;  %v1214_v41 = vpop.xlane.xlu1 %1213 }
 0x32d   : > { %v2337_v23 = vpop.eup %2336  ;;  %1497 = vst [vmem:[%s3438_s10 + $0x60] sm:$0xff] %v3516_v31  ;;  %v1353_v17 = vpack.c.bf16 %v2335_v22, %v2335_v22  ;;  %v1241_v19 = vpop.xlane.xlu2 %1240  ;;  %2338 = vrcp.f32 %v1214_v41 }
 0x32e   : > { %1514 = vst [vmem:[%s3438_s10 + $0xe8] sm:$0xff] %v1482_v5  ;;  %v1340_v57 = vpack.c.bf16 %v2337_v23, %v2337_v23  ;;  %2340 = vrcp.f32 %v1241_v19  ;;  %v1617_v2 = vunpack.c.l.b16 %v1482_v5  ;;  %v1618_v39 = vunpack.c.h.b16 %v1482_v5 }
 0x32f   : > { %v1385_v26 = vunpack.c.l.bf16 %v1353_v17  ;;  %v3947_v5 = vunpack.c.l.bf16 %v3239_v6 }
 0x330   : > { %v1372_v13 = vunpack.c.l.bf16 %v1340_v57 }
 0x331   : > { %v1445_v35 = vmul.f32 %v1385_v26, %v3941_v32  ;;  %v1446_v36 = vmul.f32 %v1385_v26, %v3942_v47  ;;  %v3945_v47 = vunpack.c.l.bf16 %v3245_v40 }
 0x332   : > { %v1419_v28 = vmul.f32 %v1372_v13, %v3943_v18  ;;  %v1420_v45 = vmul.f32 %v1372_v13, %v3944_v50  ;;  %v3946_v18 = vunpack.c.h.bf16 %v3245_v40 }
 0x333   : > { %v1481_v58 = vpack.c.bf16 %v1446_v36, %v1445_v35  ;;  %v2339_v53 = vpop.eup %2338 }
 0x334   : > { %v1468_v20 = vpack.c.bf16 %v1420_v45, %v1419_v28  ;;  %v2341_v22 = vpop.eup %2340  ;;  %v1330_v23 = vpack.c.bf16 %v2339_v53, %v2339_v53  ;;  %v1292_v17 = vpop.xlane.xlu1 %1291  ;;  %v3948_v45 = vunpack.c.h.bf16 %v3239_v6 }
 0x335   : > { %1513 = vst [vmem:[%s3438_s10 + $0xe0] sm:$0xff] %v1481_v58  ;;  %v1211_v41 = vpop.xlane.xlu2 %1210  ;;  %v1615_v19 = vunpack.c.l.b16 %v1481_v58  ;;  %v1616_v57 = vunpack.c.h.b16 %v1481_v58  ;;  %v1339_v26 = vpack.c.bf16 %v2341_v22, %v2341_v22  ;;  %2342 = vrcp.f32 %v1292_v17 }
 0x336   : > { %1500 = vst [vmem:[%s3438_s10 + $0x78] sm:$0xff] %v1468_v20  ;;  %v1362_v32 = vunpack.c.l.bf16 %v1330_v23  ;;  %2344 = vrcp.f32 %v1211_v41 }
 0x337   : > { %v3531_v38 = vpack.c.b16 %v1617_v2, %v1615_v19  ;;  %v3533_v13 = vpack.c.b16 %v1618_v39, %v1616_v57  ;;  %v1371_v35 = vunpack.c.l.bf16 %v1339_v26  ;;  %v1589_v57 = vunpack.c.l.b16 %v1468_v20 }
 0x338   : > { %v1399_v36 = vmul.f32 %v1362_v32, %v3945_v47  ;;  %v1400_v28 = vmul.f32 %v1362_v32, %v3946_v18  ;;  %v1590_v39 = vunpack.c.h.b16 %v1468_v20 }
 0x339   : > { %v1417_v50 = vmul.f32 %v1371_v35, %v3947_v5  ;;  %v1418_v58 = vmul.f32 %v1371_v35, %v3948_v45  ;;  %v3951_v45 = vunpack.c.l.bf16 %v3263_v12 }
 0x33a   : > { %v3543_v53 = vpack.c.bf16 %v1400_v28, %v1399_v36  ;;  %v3949_v28 = vunpack.c.l.bf16 %v3273_v27 }
 0x33b   : > { %v2343_v2 = vpop.eup %2342  ;;  %v1467_v22 = vpack.c.bf16 %v1418_v58, %v1417_v50  ;;  %v3950_v50 = vunpack.c.h.bf16 %v3273_v27 }
 0x33c   : > { %v2345_v23 = vpop.eup %2344  ;;  %1490 = vst [vmem:[%s3438_s10 + $0x28] sm:$0xff] %v3543_v53  ;;  %v1356_v17 = vpack.c.bf16 %v2343_v2, %v2343_v2  ;;  %v1274_v41 = vpop.xlane.xlu1 %1273  ;;  %v3952_v2 = vunpack.c.h.bf16 %v3263_v12 }
 0x33d   : > { %v1256_v19 = vpop.xlane.xlu0 %1255  ;;  %1499 = vst [vmem:[%s3438_s10 + $0x70] sm:$0xff] %v1467_v22  ;;  %v1329_v40 = vpack.c.bf16 %v2345_v23, %v2345_v23  ;;  %2346 = vrcp.f32 %v1274_v41  ;;  %v1289_v26 = vpop.xlane.xlu2 %1288  ;;  %v1587_v32 = vunpack.c.l.b16 %v1467_v22  ;;  %v1588_v47 = vunpack.c.h.b16 %v1467_v22 }
 0x33e   : > { %v1388_v6 = vunpack.c.l.bf16 %v1356_v17  ;;  %2348 = vrcp.f32 %v1289_v26 }
 0x33f   : > { %v1361_v35 = vunpack.c.l.bf16 %v1329_v40  ;;  %2350 = vrcp.f32 %v1256_v19  ;;  %v1637_v36 = vpack.c.b16 %v1589_v57, %v1587_v32  ;;  %v1638_v18 = vpack.c.b16 %v1590_v39, %v1588_v47 }
 0x340   : > { %v1451_v5 = vmul.f32 %v1388_v6, %v3949_v28  ;;  %v1452_v20 = vmul.f32 %v1388_v6, %v3950_v50  ;;  %v1583_v19 = vunpack.c.l.b16 %v3516_v31  ;;  %v1584_v57 = vunpack.c.h.b16 %v3516_v31 }
 0x341   : > { %v1397_v58 = vmul.f32 %v1361_v35, %v3951_v45  ;;  %v1398_v22 = vmul.f32 %v1361_v35, %v3952_v2  ;;  %1687 = vmatpush.bf16.xpose.msrb.mxu2 %v1637_v36  ;;  %1701 = vmatpush.bf16.xpose.msrb.mxu3 %v1638_v18  ;;  %v1585_v47 = vunpack.c.l.b16 %v3491_v8  ;;  %v1586_v6 = vunpack.c.h.b16 %v3491_v8 }
 0x342   : > { %v3556_v23 = vpack.c.bf16 %v1452_v20, %v1451_v5  ;;  %v3953_v5 = vunpack.c.l.bf16 %v3277_v33  ;;  %v3954_v20 = vunpack.c.h.bf16 %v3277_v33 }
 0x343   : > { %v2347_v17 = vpop.eup %2346  ;;  %v3558_v41 = vpack.c.bf16 %v1398_v22, %v1397_v58  ;;  %v1635_v31 = vpack.c.b16 %v1585_v47, %v1583_v19  ;;  %v1636_v28 = vpack.c.b16 %v1586_v6, %v1584_v57  ;;  %v3956_v57 = vunpack.c.h.bf16 %v3307_v37 }
 0x344   : > { %v2349_v27 = vpop.eup %2348  ;;  %1516 = vst [vmem:[%s3438_s10 + $0xf8] sm:$0xff] %v3556_v23  ;;  %v1350_v39 = vpack.c.bf16 %v2347_v17, %v2347_v17  ;;  %v1208_v40 = vpop.xlane.xlu1 %1207  ;;  %v3955_v17 = vunpack.c.l.bf16 %v3307_v37  ;;  %v1581_v47 = vunpack.c.l.b16 %v3460_v46  ;;  %v1582_v6 = vunpack.c.h.b16 %v3460_v46 }
 0x345   : > { %v2351_v26 = vpop.eup %2350  ;;  %1489 = vst [vmem:[%s3438_s10 + $0x20] sm:$0xff] %v3558_v41  ;;  %v1355_v12 = vpack.c.bf16 %v2349_v27, %v2349_v27  ;;  %2352 = vrcp.f32 %v1208_v40  ;;  %v1271_v32 = vpop.xlane.xlu2 %1270  ;;  %v3958_v46 = vunpack.c.h.bf16 %v3325_v10 }
 0x346   : > { %v1382_v35 = vunpack.c.l.bf16 %v1350_v39  ;;  %v1344_v36 = vpack.c.bf16 %v2351_v26, %v2351_v26  ;;  %2354 = vrcp.f32 %v1271_v32 }
 0x347   : > { %v1387_v18 = vunpack.c.l.bf16 %v1355_v12 }
 0x348   : > { %v1439_v50 = vmul.f32 %v1382_v35, %v3953_v5  ;;  %v1440_v45 = vmul.f32 %v1382_v35, %v3954_v20  ;;  %v1376_v58 = vunpack.c.l.bf16 %v1344_v36  ;;  %v3957_v5 = vunpack.c.l.bf16 %v3325_v10 }
 0x349   : > { %v1449_v2 = vmul.f32 %v1387_v18, %v1193_v42  ;;  %v1450_v8 = vmul.f32 %v1387_v18, %v1194_v34  ;;  %1688 = vmatpush.bf16.xpose.msrb.mxu2 %v1635_v31  ;;  %1702 = vmatpush.bf16.xpose.msrb.mxu3 %v1636_v28  ;;  %v1579_v42 = vunpack.c.l.b16 %v3493_v62  ;;  %v1634_v18 = vpack.c.b16 %v1582_v6, %v1580_v55 }
 0x34a   : > { %v3576_v22 = vpack.c.bf16 %v1440_v45, %v1439_v50  ;;  %v1427_v19 = vmul.f32 %v1376_v58, %v3955_v17  ;;  %v1428_v27 = vmul.f32 %v1376_v58, %v3956_v57 }
 0x34b   : > { %v2353_v33 = vpop.eup %2352  ;;  %v3582_v39 = vpack.c.bf16 %v1450_v8, %v1449_v2  ;;  %v1633_v36 = vpack.c.b16 %v1581_v47, %v1579_v42  ;;  %v3960_v42 = vunpack.c.l.bf16 %v3353_v29 }
 0x34c   : > { %v2355_v40 = vpop.eup %2354  ;;  %1510 = vst [vmem:[%s3438_s10 + $0xc8] sm:$0xff] %v3576_v22  ;;  %v3588_v34 = vpack.c.bf16 %v1428_v27, %v1427_v19  ;;  %v1328_v26 = vpack.c.bf16 %v2353_v33, %v2353_v33  ;;  %v1202_v12 = vpop.xlane.xlu1 %1201  ;;  %v3959_v27 = vunpack.c.h.bf16 %v3347_v56 }
 0x34d   : > { %1515 = vst [vmem:[%s3438_s10 + $0xf0] sm:$0xff] %v3582_v39  ;;  %v1349_v32 = vpack.c.bf16 %v2355_v40, %v2355_v40  ;;  %2356 = vrcp.f32 %v1202_v12  ;;  %v1205_v37 = vpop.xlane.xlu2 %1204  ;;  %v3961_v40 = vunpack.c.h.bf16 %v3353_v29 }
 0x34e   : > { %1504 = vst [vmem:[%s3438_s10 + $0x98] sm:$0xff] %v3588_v34  ;;  %v1360_v62 = vunpack.c.l.bf16 %v1328_v26  ;;  %2358 = vrcp.f32 %v1205_v37 }
 0x34f   : > { %v1381_v35 = vunpack.c.l.bf16 %v1349_v32 }
 0x350   : > { %v1395_v31 = vmul.f32 %v1360_v62, %v1139_v59  ;;  %v1396_v28 = vmul.f32 %v1360_v62, %v1140_v30 }
 0x351   : > { %v1437_v50 = vmul.f32 %v1381_v35, %v3957_v5  ;;  %v1438_v20 = vmul.f32 %v1381_v35, %v3958_v46  ;;  %1689 = vmatpush.bf16.xpose.msrb.mxu2 %v1633_v36  ;;  %1703 = vmatpush.bf16.xpose.msrb.mxu3 %v1634_v18  ;;  %v3963_v36 = vunpack.c.h.bf16 %v3367_v16 }
 0x352   : > { %v3604_v45 = vpack.c.bf16 %v1396_v28, %v1395_v31  ;;  %v3964_v28 = vunpack.c.h.bf16 %v3373_v14 }
 0x353   : > { %v2357_v58 = vpop.eup %2356  ;;  %v3606_v2 = vpack.c.bf16 %v1438_v20, %v1437_v50 }
 0x354   : > { %v2359_v8 = vpop.eup %2358  ;;  %1488 = vst [vmem:[%s3438_s10 + $0x18] sm:$0xff] %v3604_v45  ;;  %v1326_v59 = vpack.c.bf16 %v2357_v58, %v2357_v58  ;;  %v1268_v17 = vpop.xlane.xlu1 %1267  ;;  %v1567_v58 = vunpack.c.l.b16 %v3558_v41 }
 0x355   : > { %1509 = vst [vmem:[%s3438_s10 + $0xc0] sm:$0xff] %v3606_v2  ;;  %v1327_v52 = vpack.c.bf16 %v2359_v8, %v2359_v8  ;;  %2360 = vrcp.f32 %v1268_v17  ;;  %v1199_v30 = vpop.xlane.xlu2 %1198  ;;  %v1570_v17 = vunpack.c.h.b16 %v3543_v53 }
 0x356   : > { %v1358_v10 = vunpack.c.l.bf16 %v1326_v59  ;;  %2362 = vrcp.f32 %v1199_v30 }
 0x357   : > { %v1359_v19 = vunpack.c.l.bf16 %v1327_v52 }
 0x358   : > { %v1391_v57 = vmul.f32 %v1358_v10, %v1135_v4  ;;  %v1392_v33 = vmul.f32 %v1358_v10, %v3959_v27 }
 0x359   : > { %v1393_v55 = vmul.f32 %v1359_v19, %v3960_v42  ;;  %v1394_v26 = vmul.f32 %v1359_v19, %v3961_v40  ;;  %1690 = vmatpush.bf16.xpose.msrb.mxu2 %v3479_v9  ;;  %1704 = vmatpush.bf16.xpose.msrb.mxu3 %v3481_v7  ;;  %v3962_v9 = vunpack.c.l.bf16 %v3367_v16  ;;  %v1568_v16 = vunpack.c.h.b16 %v3558_v41 }
 0x35a   : > { %v3622_v12 = vpack.c.bf16 %v1392_v33, %v1391_v57  ;;  %v3965_v57 = vunpack.c.h.bf16 %v3387_v63  ;;  %v3966_v42 = vunpack.c.h.bf16 %v3393_v21  ;;  %v1565_v21 = vunpack.c.l.b16 %v3604_v45 }
 0x35b   : > { %v2361_v32 = vpop.eup %2360  ;;  %v1455_v37 = vpack.c.bf16 %v1394_v26, %v1393_v55  ;;  %v1628_v41 = vpack.c.b16 %v1570_v17, %v1568_v16 }
 0x35c   : > { %v2363_v47 = vpop.eup %2362  ;;  %1486 = vst [vmem:[%s3438_s10 + $0x8] sm:$0xff] %v3622_v12  ;;  %v1348_v4 = vpack.c.bf16 %v2361_v32, %v2361_v32  ;;  %v1262_v56 = vpop.xlane.xlu1 %1261  ;;  %v1561_v16 = vunpack.c.l.b16 %v3622_v12 }
 0x35d   : > { %1487 = vst [vmem:[%s3438_s10 + $0x10] sm:$0xff] %v1455_v37  ;;  %v1325_v6 = vpack.c.bf16 %v2363_v47, %v2363_v47  ;;  %2364 = vrcp.f32 %v1262_v56  ;;  %v1265_v62 = vpop.xlane.xlu2 %1264  ;;  %v1563_v32 = vunpack.c.l.b16 %v1455_v37  ;;  %v1564_v47 = vunpack.c.h.b16 %v1455_v37 }
 0x35e   : > { %v1380_v29 = vunpack.c.l.bf16 %v1348_v4  ;;  %2366 = vrcp.f32 %v1265_v62  ;;  %v1566_v56 = vunpack.c.h.b16 %v3604_v45  ;;  %v3967_v37 = vunpack.c.l.bf16 %v3403_v0 }
 0x35f   : > { %v1357_v35 = vunpack.c.l.bf16 %v1325_v6 }
 0x360   : > { %v1435_v7 = vmul.f32 %v1380_v29, %v3962_v9  ;;  %v1436_v18 = vmul.f32 %v1380_v29, %v3963_v36  ;;  %v1625_v29 = vpack.c.b16 %v1565_v21, %v1563_v32 }
 0x361   : > { %v1389_v31 = vmul.f32 %v1357_v35, %v1133_v1  ;;  %v1390_v5 = vmul.f32 %v1357_v35, %v3964_v28  ;;  %1691 = vmatpush.bf16.xpose.msrb.mxu2 %v3465_v54  ;;  %1705 = vmatpush.bf16.xpose.msrb.mxu3 %v3467_v44  ;;  %v1569_v44 = vunpack.c.l.b16 %v3543_v53  ;;  %v1626_v35 = vpack.c.b16 %v1566_v56, %v1564_v47 }
 0x362   : > { %v3637_v50 = vpack.c.bf16 %v1436_v18, %v1435_v7  ;;  %v3968_v7 = vunpack.c.h.bf16 %v3403_v0  ;;  %v1619_v0 = vunpack.c.l.b16 %v3582_v39  ;;  %v1607_v47 = vunpack.c.l.b16 %v3606_v2 }
 0x363   : > { %v2365_v46 = vpop.eup %2364  ;;  %v3639_v20 = vpack.c.bf16 %v1390_v5, %v1389_v31  ;;  %v1627_v10 = vpack.c.b16 %v1569_v44, %v1567_v58 }
 0x364   : > { %v2367_v8 = vpop.eup %2366  ;;  %1508 = vst [vmem:[%s3438_s10 + $0xb8] sm:$0xff] %v3637_v50  ;;  %v1346_v1 = vpack.c.bf16 %v2365_v46, %v2365_v46  ;;  %v1247_v59 = vpop.xlane.xlu1 %1246 }
 0x365   : > { %1485 = vst [vmem:[%s3438_s10] sm:$0xff] %v3639_v20  ;;  %v1347_v14 = vpack.c.bf16 %v2367_v8, %v2367_v8  ;;  %2368 = vrcp.f32 %v1247_v59  ;;  %v1259_v54 = vpop.xlane.xlu2 %1258  ;;  %v1559_v5 = vunpack.c.l.b16 %v3639_v20  ;;  %v1560_v46 = vunpack.c.h.b16 %v3639_v20 }
 0x366   : > { %v1378_v52 = vunpack.c.l.bf16 %v1346_v1  ;;  %2370 = vrcp.f32 %v1259_v54  ;;  %v1562_v8 = vunpack.c.h.b16 %v3622_v12  ;;  %v1621_v20 = vunpack.c.l.b16 %v3556_v23 }
 0x367   : > { %v1379_v30 = vunpack.c.l.bf16 %v1347_v14  ;;  %v1622_v1 = vunpack.c.h.b16 %v3556_v23  ;;  %v1623_v14 = vpack.c.b16 %v1561_v16, %v1559_v5  ;;  %v2087_v23 = vld [vmem:[%s2821_s9 + $0x4] sm:$0xf] }
 0x368   : > { %v1431_v19 = vmul.f32 %v1378_v52, %v1175_v48  ;;  %v1432_v27 = vmul.f32 %v1378_v52, %v3965_v57  ;;  %v1653_v54 = vpack.c.b16 %v1621_v20, %v1619_v0  ;;  %v3969_v52 = vunpack.c.h.bf16 %v3423_v43 }
 0x369   : > { %v1433_v33 = vmul.f32 %v1379_v30, %v1177_v51  ;;  %v1434_v55 = vmul.f32 %v1379_v30, %v3966_v42  ;;  %1692 = vmatpush.bf16.xpose.msrb.mxu2 %v1627_v10  ;;  %1706 = vmatpush.bf16.xpose.msrb.mxu3 %v1628_v41  ;;  %v2065_v30 = vld [vmem:[%s2821_s9] sm:$0xf]  ;;  %v2088_v10 = vld [vmem:[%s2821_s9 + $0x4] sm:$0xf0] }
 0x36a   : > { %v3657_v53 = vpack.c.bf16 %v1432_v27, %v1431_v19  ;;  %v2067_v19 = vld [vmem:[%s2821_s9 + $0x8] sm:$0xf0]  ;;  %v2066_v27 = vor.u32 %v2088_v10, %v2065_v30 }
 0x36b   : > { %v2369_v40 = vpop.eup %2368  ;;  %v3659_v26 = vpack.c.bf16 %v1434_v55, %v1433_v33  ;;  %v2070_v33 = vor.u32 %v2087_v23, %v2067_v19 }
 0x36c   : > { %v2371_v4 = vpop.eup %2370  ;;  %1506 = vst [vmem:[%s3438_s10 + $0xa8] sm:$0xff] %v3657_v53  ;;  %v1341_v63 = vpack.c.bf16 %v2369_v40, %v2369_v40  ;;  %v1601_v56 = vunpack.c.l.b16 %v3657_v53 }
 0x36d   : > { %1507 = vst [vmem:[%s3438_s10 + $0xb0] sm:$0xff] %v3659_v26  ;;  %v1345_v48 = vpack.c.bf16 %v2371_v4, %v2371_v4  ;;  %v1253_v51 = vpop.xlane.xlu2 %1252  ;;  %v1608_v4 = vunpack.c.h.b16 %v3606_v2 }
 0x36e   : > { %v1373_v6 = vunpack.c.l.bf16 %v1341_v63  ;;  %2372 = vrcp.f32 %v1253_v51  ;;  %v1609_v63 = vunpack.c.l.b16 %v3576_v22 }
 0x36f   : > { %v1377_v62 = vunpack.c.l.bf16 %v1345_v48 }
 0x370   : > { %v1421_v9 = vmul.f32 %v1373_v6, %v3967_v37  ;;  %v1422_v36 = vmul.f32 %v1373_v6, %v3968_v7  ;;  %v1602_v6 = vunpack.c.h.b16 %v3657_v53  ;;  %v1598_v37 = vunpack.c.h.b16 %v3588_v34 }
 0x371   : > { %v1429_v18 = vmul.f32 %v1377_v62, %v1173_v24  ;;  %v1430_v31 = vmul.f32 %v1377_v62, %v1174_v60  ;;  %1693 = vmatpush.bf16.xpose.msrb.mxu2 %v1625_v29  ;;  %1707 = vmatpush.bf16.xpose.msrb.mxu3 %v1626_v35  ;;  %v1620_v24 = vunpack.c.h.b16 %v3582_v39  ;;  %v1624_v39 = vpack.c.b16 %v1562_v8, %v1560_v46 }
 0x372   : > { %v3675_v45 = vpack.c.bf16 %v1422_v36, %v1421_v9 }
 0x373   : > { %v3677_v28 = vpack.c.bf16 %v1430_v31, %v1429_v18  ;;  %v1654_v44 = vpack.c.b16 %v1622_v1, %v1620_v24 }
 0x374   : > { %v2373_v58 = vpop.eup %2372  ;;  %1501 = vst [vmem:[%s3438_s10 + $0x80] sm:$0xff] %v3675_v45  ;;  %v1591_v53 = vunpack.c.l.b16 %v3675_v45  ;;  %v1592_v31 = vunpack.c.h.b16 %v3675_v45 }
 0x375   : > { %1505 = vst [vmem:[%s3438_s10 + $0xa0] sm:$0xff] %v3677_v28  ;;  %v1343_v3 = vpack.c.bf16 %v2373_v58, %v2373_v58  ;;  %v1250_v60 = vpop.xlane.xlu2 %1249  ;;  %v1599_v2 = vunpack.c.l.b16 %v3677_v28 }
 0x376   : > { %2374 = vrcp.f32 %v1250_v60 }
 0x377   : > { %v1375_v59 = vunpack.c.l.bf16 %v1343_v3  ;;  %v1643_v62 = vpack.c.b16 %v1601_v56, %v1599_v2 }
 0x379   : > { %v1425_v17 = vmul.f32 %v1375_v59, %v1169_v11  ;;  %v1426_v12 = vmul.f32 %v1375_v59, %v3969_v52  ;;  %1694 = vmatpush.bf16.xpose.msrb.mxu2 %v1623_v14  ;;  %1708 = vmatpush.bf16.xpose.msrb.mxu3 %v1624_v39  ;;  %v3970_v11 = vunpack.c.h.bf16 %v3436_v25  ;;  %v1647_v25 = vpack.c.b16 %v1609_v63, %v1607_v47 }
 0x37b   : > { %v1471_v41 = vpack.c.bf16 %v1426_v12, %v1425_v17 }
 0x37c   : > { %v2375_v57 = vpop.eup %2374 }
 0x37d   : > { %1503 = vst [vmem:[%s3438_s10 + $0x90] sm:$0xff] %v1471_v41  ;;  %v1342_v42 = vpack.c.bf16 %v2375_v57, %v2375_v57  ;;  %v1596_v35 = vunpack.c.h.b16 %v1471_v41 }
 0x37f   : > { %v1374_v55 = vunpack.c.l.bf16 %v1342_v42  ;;  %v1642_v7 = vpack.c.b16 %v1598_v37, %v1596_v35 }
 0x380   : > { %1695 = vmatmul.bf16.vlgmr.msrb.gmra.mxu2 %v2066_v27  ;;  %1709 = vmatmul.bf16.vlgmr.msrb.gmra.mxu3 %v2070_v33 }
 0x381   : > { %1715 = vmatpush.bf16.xpose.msra.mxu2 %v1653_v54  ;;  %1729 = vmatpush.bf16.xpose.msra.mxu3 %v1654_v44  ;;  %v1423_v43 = vmul.f32 %v1374_v55, %v1167_v15  ;;  %v1424_v40 = vmul.f32 %v1374_v55, %v3970_v11  ;;  %v1610_v15 = vunpack.c.h.b16 %v3576_v22  ;;  %v1600_v22 = vunpack.c.h.b16 %v3677_v28 }
 0x383   : > { %v1470_v32 = vpack.c.bf16 %v1424_v40, %v1423_v43  ;;  %v1648_v48 = vpack.c.b16 %v1610_v15, %v1608_v4  ;;  %v1644_v29 = vpack.c.b16 %v1602_v6, %v1600_v22 }
 0x385   : > { %1502 = vst [vmem:[%s3438_s10 + $0x88] sm:$0xff] %v1470_v32  ;;  %v1593_v36 = vunpack.c.l.b16 %v1470_v32  ;;  %v1594_v18 = vunpack.c.h.b16 %v1470_v32 }
 0x387   : > { %v1639_v28 = vpack.c.b16 %v1593_v36, %v1591_v53  ;;  %v1640_v5 = vpack.c.b16 %v1594_v18, %v1592_v31 }
 0x389   : > { %1716 = vmatpush.bf16.xpose.msra.mxu2 %v3531_v38  ;;  %1730 = vmatpush.bf16.xpose.msra.mxu3 %v3533_v13  ;;  %v1603_v38 = vunpack.c.l.b16 %v3659_v26  ;;  %v1604_v13 = vunpack.c.h.b16 %v3659_v26  ;;  %v1595_v26 = vunpack.c.l.b16 %v1471_v41 }
 0x391   : > { %1717 = vmatpush.bf16.xpose.msra.mxu2 %v3504_v61  ;;  %1731 = vmatpush.bf16.xpose.msra.mxu3 %v3506_v49  ;;  %v1605_v61 = vunpack.c.l.b16 %v3637_v50  ;;  %v1606_v49 = vunpack.c.h.b16 %v3637_v50  ;;  %v1597_v50 = vunpack.c.l.b16 %v3588_v34 }
 0x393   : > { %v1645_v51 = vpack.c.b16 %v1605_v61, %v1603_v38  ;;  %v1646_v21 = vpack.c.b16 %v1606_v49, %v1604_v13  ;;  %v1641_v9 = vpack.c.b16 %v1597_v50, %v1595_v26 }
 0x399   : > { %1718 = vmatpush.bf16.xpose.msra.mxu2 %v1647_v25  ;;  %1732 = vmatpush.bf16.xpose.msra.mxu3 %v1648_v48 }
 0x3a1   : > { %1719 = vmatpush.bf16.xpose.msra.mxu2 %v1645_v51  ;;  %1733 = vmatpush.bf16.xpose.msra.mxu3 %v1646_v21 }
 0x3a9   : > { %1720 = vmatpush.bf16.xpose.msra.mxu2 %v1643_v62  ;;  %1734 = vmatpush.bf16.xpose.msra.mxu3 %v1644_v29 }
 0x3b1   : > { %1721 = vmatpush.bf16.xpose.msra.mxu2 %v1641_v9  ;;  %1735 = vmatpush.bf16.xpose.msra.mxu3 %v1642_v7 }
 0x3b9   : > { %1722 = vmatpush.bf16.xpose.msra.mxu2 %v1639_v28  ;;  %1736 = vmatpush.bf16.xpose.msra.mxu3 %v1640_v5 }
 0x3c0   : > { %1723 = vmatmul.bf16.vlgmr.msra.gmra.mxu2 %v2066_v27  ;;  %1737 = vmatmul.bf16.vlgmr.msra.gmra.mxu3 %v2070_v33 }
 0x3c1   : > { %2523 = shalt.err (!%p2520_p13)
}
 0x3c2   : > { %s2624_s14 = smov 128   ;;  %s2625_s16 = smov 8   ;;  %v442_v0 = vld [vmem:[%s2808_s23] sm:$0xff]  ;;  %v444_v20 = vld [vmem:[%s2808_s23 + $0x10] sm:$0xff]  ;;  %v443_v44 = vld [vmem:[%s2808_s23 + $0x8] sm:$0xff] }
 0x3c3   : > { %2102 = dma.vmem_to_hbm [thread:$0]  (%p2721_p9), %s1798_s21, 4096, %s1800_s29, %s1763_s2, %s2624_s14, %s2624_s14, %s2625_s16  }
 0x3c4   : > { %s1743_s17 = sld [smem:[#allocation2]]  ;;  %s423_s18 = scalar_lea.vmem [#allocation11], %s2009_s1  ;;  %v445_v23 = vld [vmem:[%s2808_s23 + $0x18] sm:$0xff] }
 0x3c5   : > { %s2089_s8 = sshll.u32 %s2610_s26, 5  ;;  %s3971_s28 = sld [smem:[#allocation49_spill]] }
 0x3c6   : > { %s1777_s19 = sshll.u32 %s423_s18, 4  ;;  %s1758_s7 = scalar_lea.sflag [#allocation5], %s2802_s0  ;;  %s1778_s19 = int_to_ptr.vmem [resolvable:$true] %s1777_s19 }
 0x3ca   : > { %v1744_v46 = vstv %s1743_s17 }
 0x3cb   : > { %s1776_s10 = scalar_lea.hbm %s3971_s28, %s2089_s8  ;;  %s2544_s2 = scalar_lea.hbm %s3971_s28, 64 }
 0x3cc   : > { %s1779_s22 = sshll.u32 %s1776_s10, 4  ;;  %s1780_s22 = int_to_ptr.hbm [resolvable:$true] %s1779_s22 }
 0x3cd   : > { %s2538_s26 = sshra.s32 %s1780_s22, 4  ;;  %s2539_s26 = int_to_ptr.hbm [resolvable:$true] %s2538_s26 }
 0x3ce   : > { %s2540_s15 = scalar_lea.hbm %s2539_s26, 32  ;;  %p2545_p3 = scmp.lt.s32.totalorder %s2539_s26, %s3971_s28 }
 0x3cf   : > { %p2541_p0 = scmp.ne.s32.totalorder %s2539_s26, %s2540_s15  ;;  %p2546_p4 = scmp.lt.s32.totalorder %s2544_s2, %s2540_s15 }
 0x3d1   : > { %p2542_p1 = pnand %p2541_p0, %p2721_p9  ;;  %p2547_p5 = por %p2546_p4, %p2545_p3 }
 0x3d3   : > { %p2543_p2 = pneg %p2542_p1 }
 0x3d5   : > { %p2548_p6 = pnand %p2547_p5, %p2543_p2 }
 0x403   : > { %v1696_v34 = vpop.f32.mrf.mxu2  ;;  %v1710_v45 = vpop.f32.mrf.mxu3 }
 0x404   : > { %v1711_v58 = vadd.f32 %v1710_v45, %v1696_v34 }
 0x406   : > { %v1745_v24 = vmul.f32 %v1744_v46, %v1711_v58 }
 0x408   : > { %v1749_v3 = vadd.f32 %v1745_v24, %v442_v0 }
 0x40a   : > { %1753 = vst [vmem:[%s423_s18] sm:$0xff] %v1749_v3 }
 0x40b   : > { %v1698_v60 = vpop.f32.mrf.mxu2  ;;  %v1712_v16 = vpop.f32.mrf.mxu3 }
 0x40c   : > { %v1713_v8 = vadd.f32 %v1712_v16, %v1698_v60 }
 0x40e   : > { %v1747_v1 = vmul.f32 %v1744_v46, %v1713_v8 }
 0x410   : > { %v1751_v59 = vadd.f32 %v1747_v1, %v444_v20 }
 0x412   : > { %1755 = vst [vmem:[%s423_s18 + $0x10] sm:$0xff] %v1751_v59 }
 0x443   : > { %v1724_v14 = vpop.f32.mrf.mxu2  ;;  %v1738_v39 = vpop.f32.mrf.mxu3 }
 0x444   : > { %v1739_v54 = vadd.f32 %v1738_v39, %v1724_v14 }
 0x446   : > { %v1746_v17 = vmul.f32 %v1744_v46, %v1739_v54 }
 0x448   : > { %v1750_v52 = vadd.f32 %v1746_v17, %v443_v44 }
 0x44a   : > { %1754 = vst [vmem:[%s423_s18 + $0x8] sm:$0xff] %v1750_v52 }
 0x44b   : > { %v1726_v12 = vpop.f32.mrf.mxu2  ;;  %v1740_v30 = vpop.f32.mrf.mxu3 }
 0x44c   : > { %v1741_v10 = vadd.f32 %v1740_v30, %v1726_v12 }
 0x44e   : > { %v1748_v41 = vmul.f32 %v1744_v46, %v1741_v10 }
 0x450   : > { %v1752_v19 = vadd.f32 %v1748_v41, %v445_v23 }
 0x452   : > { %1756 = vst [vmem:[%s423_s18 + $0x18] sm:$0xff] %v1752_v19 }
 0x453   : > { %2551 = shalt.err (!%p2548_p6)
}
 0x454   : > { %s2626_s0 = smov 256   ;;  %s2627_s20 = smov 16  }
 0x455   : > { %2101 = dma.vmem_to_hbm [thread:$0]  (%p2721_p9), %s1778_s19, 512, %s1780_s22, %s1758_s7, %s2626_s0, %s2626_s0, %s2627_s20  }
 0x456 PF: > { %s3972_s30 = sld [smem:[#allocation19_spill]]  ;;  %p2119_p7 = pnand %p1995_p12, %p2728_p11 }
 0x457   : > { %s3974_s27 = sld [smem:[#allocation22_spill]] }
 0x458   : > { %p2120_p8 = pneg %p2119_p7 }
 0x45c   : > { %s1814_s5 = sand.u32 1, %s3972_s30  }
 0x45d   : > { %s1815_s13 = scalar_lea.sflag [#allocation5], %s1814_s5 }
 0x45e   : > { %2589 = dma.done.wait (%p2120_p8), %s1815_s13, 512  }
 0x45f   : > { %2591 = vsyncadd (%p2120_p8), %s1815_s13, 4294966784  ;;  %s1825_s14 = scalar_lea.sflag [#allocation13], %s1814_s5 }
 0x460   : > { %2593 = dma.done.wait (%p2120_p8), %s1825_s14, 4096  }
 0x461   : > { %2595 = vsyncadd (%p2120_p8), %s1825_s14, 4294963200  ;;  %s33_s0 = sadd.s32 1, %s3974_s27   ;;  %s3975_s11 = sld [smem:[#allocation20_spill]] }
 0x462   : > { %p30_p10 = scmp.ge.s32.totalorder %s33_s0, 4   ;;  %s3976_s25 = sld [smem:[#allocation24_spill]] }
 0x463   : > { %s3977_s26 = sld [smem:[#allocation21_spill]]  ;;  %s3979_s23 = smov %s2602_s24 }
 0x464   : > { %s3978_s27 = sld [smem:[#allocation23_spill]]  ;;  %32 = sbr.rel (!%p30_p10) target bundleno = 17 (0x11), region = 139 }
 0x467   : > { %s3980_s24 = smov %s3975_s11 }
 0x469   :  { %1831 = vsyncpa [#allocation4], 1 }
 0x46a   :  { %1833 = vsyncpa [#allocation4 + $0x1], 1 }
 0x46b   :  { %1834 = vsyncpa [#allocation7], 1 }
 0x46c   :  { %1836 = vsyncpa [#allocation7 + $0x1], 1 }
 0x46d   :  { %1837 = vsyncpa [#allocation10], 1 }
 0x46e   :  { %1839 = vsyncpa [#allocation10 + $0x1], 1 }
 0x46f   :  { %1840 = vsyncpa [#allocation5], 1 }
 0x470   :  { %1842 = vsyncpa [#allocation5 + $0x1], 1 }
 0x471   :  { %1843 = vsyncpa [#allocation13], 1 }
 0x472   :  { %1845 = vsyncpa [#allocation13 + $0x1], 1 }

</bundles_post_ra>
